<compile_context>
chip_gen: v5e
topology: v5e:2x2
jax: 0.10.0
libtpu: 0.0.40
codegen_flags: <defaults>
</compile_context>

<pallas_src>
import jax
import jax.numpy as jnp
from jax.experimental import pallas as pl
from jax.experimental.pallas import tpu as pltpu

D_MODEL = 256  # required by Linear(256, 256)


def _attn_kernel(x1_ref, x2_ref, w_ref, o_ref):
    # x1_ref: (tq, D) bf16; x2_ref: (K, D) bf16; w_ref: (D, D) bf16 (out, in);
    # o_ref: (tq, D) f32.
    x1 = x1_ref[...]
    x2 = x2_ref[...]
    w = w_ref[...]

    # Fold the Linear into the K-side operand and fold the 1/5 score scale:
    #   x2w[k, i] = (sum_o x2[k, o] * W[o, i]) * 0.2
    # Grid has at most 2 q steps per batch, so the recompute cost is negligible
    # and it removes a separate XLA launch + HBM round-trip for x2w.
    x2w = (jnp.dot(x2, w, preferred_element_type=jnp.float32) * 0.2
           ).astype(jnp.bfloat16)                                    # (K, D)

    # Scores: s[q, k] = sum_i x1[q, i] * x2w[k, i]  (contract lane dims — the
    # standard flash-attention q·k pattern, no materialized transpose).
    s = jax.lax.dot_general(x1, x2w, (((1,), (1,)), ((), ())),
                            preferred_element_type=jnp.float32)       # (tq, K)

    # Numerically stable softmax over K (f32 math; EUP approximate reciprocal).
    m = jnp.max(s, axis=-1, keepdims=True)
    e = jnp.exp(s - m)
    denom = jnp.sum(e, axis=-1, keepdims=True)
    p = (e * pl.reciprocal(denom, approx=True)).astype(jnp.bfloat16)  # (tq, K)

    # Dropout(p=0.1) is identity at inference time.
    # TODO(synk): training-mode dropout would need pltpu.prng_* masking + 1/0.9 scale.

    # Output: p @ x2 with f32 accumulation.
    o_ref[...] = jnp.dot(p, x2, preferred_element_type=jnp.float32).astype(o_ref.dtype)


def _tensorcores_per_chip():
    """2 TensorCores on v7x, 1 on v5e/v6e.  Conservative fallback: 1."""
    try:
        kind = jax.devices()[0].device_kind.lower()
    except Exception:
        return 1
    return 2 if "v7" in kind else 1


def _pick_tq(B, S, num_cores):
    """Generation-aware q tile: the grid is a serial loop on a single TC, so
    use one q step per batch (tq = S) on 1-TC chips; on 2-TC chips split the
    q axis so each core gets exactly one tile (keep tq a multiple of 16 for
    bf16 sublane packing)."""
    if num_cores <= 1 or B >= num_cores:
        return S
    half = S // num_cores
    if half >= 16 and half % 16 == 0 and S % half == 0:
        return half
    return S


def model_forward(x1, x2, weight, *, tq=None):
    """x1: (B, S, 256), x2: (B, K, 256), weight: (256, 256) PyTorch-style (out, in)."""
    B, S, D = x1.shape
    _, K, D2 = x2.shape
    assert D == D_MODEL and D2 == D_MODEL and weight.shape == (D_MODEL, D_MODEL)
    if tq is None:
        tq = _pick_tq(B, S, _tensorcores_per_chip())
    assert S % tq == 0

    # bf16 MXU operands (f32 accumulation inside the kernel): cuts MXU passes
    # ~3x vs f32 and halves HBM/DMA bytes on a latency/DMA-bound kernel.
    x1b = x1.astype(jnp.bfloat16)
    x2b = x2.astype(jnp.bfloat16)
    wb = weight.astype(jnp.bfloat16)

    grid = (B, S // tq)
    # x2 is DMA'd once per batch and weight once total (their block indices do
    # not change across q steps) — no num_q_tiles factor in bytes_accessed.
    bytes_in = 2 * (B * S * D) + 2 * (B * K * D) + 2 * (D * D)
    bytes_out = 4 * (B * S * D)
    cost = pl.CostEstimate(
        flops=4 * B * S * K * D + 2 * B * K * D * D,   # two attention matmuls + folded Linear
        transcendentals=B * S * K,                      # exp in softmax
        bytes_accessed=bytes_in + bytes_out,
    )

    # TODO(synk): for very large K, tile the K axis with an online softmax and
    # set pipeline_mode=pl.Buffered(1) on the q-invariant x2/weight specs; at
    # K=64 the whole (K, D) block fits trivially in VMEM on all generations.
    return pl.pallas_call(
        _attn_kernel,
        out_shape=jax.ShapeDtypeStruct((B, S, D), x1.dtype),
        grid_spec=pltpu.PrefetchScalarGridSpec(
            num_scalar_prefetch=0,
            grid=grid,
            in_specs=[
                pl.BlockSpec((pl.Squeezed(), tq, D), lambda b, i: (b, i, 0)),
                pl.BlockSpec((pl.Squeezed(), K, D), lambda b, i: (b, 0, 0)),
                pl.BlockSpec((D, D), lambda b, i: (0, 0)),
            ],
            out_specs=pl.BlockSpec((pl.Squeezed(), tq, D), lambda b, i: (b, i, 0)),
        ),
        # TODO(synk): on v7x, verify with a trace that the q axis is sharded
        # across both TensorCores; if not, switch its axis to pltpu.CORE_PARALLEL.
        compiler_params=pltpu.CompilerParams(
            dimension_semantics=("parallel", "parallel")),
        cost_estimate=cost,
    )(x1b, x2b, wb)


def _reference(x1, x2, weight):
    """Faithful f32 port of the PyTorch module (inference semantics)."""
    v1 = jnp.einsum("bsi,oi->bso", x1, weight)   # Linear, no bias
    v2 = jnp.einsum("bso,bko->bsk", v1, x2)      # v1 @ x2^T
    v3 = v2 / 5.0
    v4 = jax.nn.softmax(v3, axis=-1)
    return jnp.einsum("bsk,bkd->bsd", v4, x2)    # v4 @ x2


if __name__ == "__main__":
    key = jax.random.PRNGKey(0)
    k1, k2, k3 = jax.random.split(key, 3)

    # Shapes matching the module's intent: x1 (1, 256, 256), x2 (1, 64, 256)
    # (Linear(256, 256) forces the 256 feature dim).
    B, S, K = 1, 256, 64
    x1 = jax.random.normal(k1, (B, S, D_MODEL), dtype=jnp.float32)
    x2 = jax.random.normal(k2, (B, K, D_MODEL), dtype=jnp.float32)

    # Deterministic Linear(256, 256, bias=False) weight (PyTorch-style uniform).
    bound = 1.0 / (D_MODEL ** 0.5)
    weight = jax.random.uniform(k3, (D_MODEL, D_MODEL), dtype=jnp.float32,
                                minval=-bound, maxval=bound)

    fwd = jax.jit(model_forward)
    out = jax.block_until_ready(fwd(x1, x2, weight))

    ref = _reference(x1, x2, weight)
    assert out.shape == (B, S, D_MODEL)
    # Tolerance absorbs bf16 matmul operands (f32 accumulate), the EUP
    # approximate softmax reciprocal, and the algebraically-equivalent but
    # differently-rounded weight folding.
    assert jnp.allclose(out, ref, atol=5e-2, rtol=5e-2), "mismatch vs reference"

    print("KERNEL_OK")
</pallas_src>

<mosaic_0001>
module attributes {stable_mosaic.version = 11 : i64} {
  func.func @_attn_kernel(%arg0: i32, %arg1: i32, %arg2: memref<1x256x256xbf16, #tpu.memory_space<vmem>>, %arg3: memref<1x64x256xbf16, #tpu.memory_space<vmem>>, %arg4: memref<256x256xbf16, #tpu.memory_space<vmem>>, %arg5: memref<1x256x256xf32, #tpu.memory_space<vmem>>) attributes {dimension_semantics = [#tpu.dimension_semantics<parallel>, #tpu.dimension_semantics<parallel>], iteration_bounds = array<i64: 1, 1>, scalar_prefetch = 0 : i64, scratch_operands = 0 : i64, tpu.core_type = #tpu.core_type<tc>, window_params = [{transform_indices = @transform_0, window_bounds = array<i64: 1, 256, 256>}, {transform_indices = @transform_1, window_bounds = array<i64: 1, 64, 256>}, {pipeline_mode = #tpu.pipeline_mode<synchronous>, transform_indices = @transform_2, window_bounds = array<i64: 256, 256>}, {transform_indices = @transform_3, window_bounds = array<i64: 1, 256, 256>}]} {
    %c0 = arith.constant 0 : index
    %c0_0 = arith.constant 0 : index
    %c0_1 = arith.constant 0 : index
    %0 = vector.load %arg2[%c0, %c0_0, %c0_1] : memref<1x256x256xbf16, #tpu.memory_space<vmem>>, vector<1x256x256xbf16>
    %1 = vector.shape_cast %0 : vector<1x256x256xbf16> to vector<256x256xbf16>
    %c0_2 = arith.constant 0 : index
    %c0_3 = arith.constant 0 : index
    %c0_4 = arith.constant 0 : index
    %2 = vector.load %arg3[%c0_2, %c0_3, %c0_4] : memref<1x64x256xbf16, #tpu.memory_space<vmem>>, vector<1x64x256xbf16>
    %3 = vector.shape_cast %2 : vector<1x64x256xbf16> to vector<64x256xbf16>
    %c0_5 = arith.constant 0 : index
    %c0_6 = arith.constant 0 : index
    %4 = vector.load %arg4[%c0_5, %c0_6] : memref<256x256xbf16, #tpu.memory_space<vmem>>, vector<256x256xbf16>
    %cst = arith.constant dense<0.000000e+00> : vector<64x256xf32>
    %5 = tpu.matmul %3, %4, %cst {dimension_numbers = #tpu.dot_dimension_numbers<[1], [0], [0], [1], [0, 0, 1, 1], [], []>} : vector<64x256xbf16>, vector<256x256xbf16>, vector<64x256xf32> -> vector<64x256xf32>
    %cst_7 = arith.constant 2.000000e-01 : f32
    %6 = vector.broadcast %cst_7 : f32 to vector<64x256xf32>
    %7 = arith.mulf %5, %6 : vector<64x256xf32>
    %8 = arith.truncf %7 : vector<64x256xf32> to vector<64x256xbf16>
    %cst_8 = arith.constant dense<0.000000e+00> : vector<256x64xf32>
    %9 = tpu.matmul %1, %8, %cst_8 {dimension_numbers = #tpu.dot_dimension_numbers<[1], [1], [0], [0], [0, 0, 1, 0], [], []>} : vector<256x256xbf16>, vector<64x256xbf16>, vector<256x64xf32> -> vector<256x64xf32>
    %cst_9 = arith.constant dense<0xFF800000> : vector<256xf32>
    %10 = vector.multi_reduction <maximumf>, %9, %cst_9 [1] : vector<256x64xf32> to vector<256xf32>
    %11 = vector.shape_cast %10 : vector<256xf32> to vector<256x1xf32>
    %12 = vector.broadcast %11 : vector<256x1xf32> to vector<256x64xf32>
    %13 = arith.subf %9, %12 : vector<256x64xf32>
    %14 = math.exp %13 : vector<256x64xf32>
    %cst_10 = arith.constant dense<0.000000e+00> : vector<256xf32>
    %15 = vector.multi_reduction <add>, %14, %cst_10 [1] : vector<256x64xf32> to vector<256xf32>
    %16 = vector.shape_cast %15 : vector<256xf32> to vector<256x1xf32>
    %17 = tpu.reciprocal %16 {approx = true} : vector<256x1xf32> -> vector<256x1xf32>
    %18 = vector.broadcast %17 : vector<256x1xf32> to vector<256x64xf32>
    %19 = arith.mulf %14, %18 : vector<256x64xf32>
    %20 = arith.truncf %19 : vector<256x64xf32> to vector<256x64xbf16>
    %cst_11 = arith.constant dense<0.000000e+00> : vector<256x256xf32>
    %21 = tpu.matmul %20, %3, %cst_11 {dimension_numbers = #tpu.dot_dimension_numbers<[1], [0], [0], [1], [0, 0, 1, 1], [], []>} : vector<256x64xbf16>, vector<64x256xbf16>, vector<256x256xf32> -> vector<256x256xf32>
    %c0_12 = arith.constant 0 : index
    %c0_13 = arith.constant 0 : index
    %c0_14 = arith.constant 0 : index
    %22 = vector.load %arg5[%c0_12, %c0_13, %c0_14] : memref<1x256x256xf32, #tpu.memory_space<vmem>>, vector<1x256x256xf32>
    %23 = vector.shape_cast %22 : vector<1x256x256xf32> to vector<256x256xf32>
    %24 = vector.shape_cast %21 : vector<256x256xf32> to vector<1x256x256xf32>
    tpu.vector_store %arg5[%c0_12, %c0_13, %c0_14], %24 {strides = array<i32>} : memref<1x256x256xf32, #tpu.memory_space<vmem>>, vector<1x256x256xf32>,
    return
  }
  func.func @transform_0(%arg0: i32, %arg1: i32) -> (i32, i32, i32) {
    %c0_i32 = arith.constant 0 : i32
    %c0_i32_0 = arith.constant 0 : i32
    return %arg0, %arg1, %c0_i32 : i32, i32, i32
  }
  func.func @transform_1(%arg0: i32, %arg1: i32) -> (i32, i32, i32) {
    %c0_i32 = arith.constant 0 : i32
    %c0_i32_0 = arith.constant 0 : i32
    %c0_i32_1 = arith.constant 0 : i32
    return %arg0, %c0_i32, %c0_i32_0 : i32, i32, i32
  }
  func.func @transform_2(%arg0: i32, %arg1: i32) -> (i32, i32) {
    %c0_i32 = arith.constant 0 : i32
    %c0_i32_0 = arith.constant 0 : i32
    %c0_i32_1 = arith.constant 0 : i32
    return %c0_i32, %c0_i32_0 : i32, i32
  }
  func.func @transform_3(%arg0: i32, %arg1: i32) -> (i32, i32, i32) {
    %c0_i32 = arith.constant 0 : i32
    %c0_i32_0 = arith.constant 0 : i32
    return %arg0, %arg1, %c0_i32 : i32, i32, i32
  }
}

</mosaic_0001>

<bundles_post_ra>
// kernel: model_forward.1
= control target key start
LH: loop header
LB: loop body
LE: loop exit
PB: predicated region body
PF: predicated region fallthrough
CT: control target
= control target key end

     0   :  { %s2811_s0 = inlined_call_operand.vmem [shape: bf16[1,256,256], index: 0, kind: input, shape index: {}]   ;;  %s2812_s1 = inlined_call_operand.vmem [shape: bf16[1,64,256], index: 1, kind: input, shape index: {}]   ;;  %s2813_s2 = inlined_call_operand.vmem [shape: bf16[256,256], index: 2, kind: input, shape index: {}]   ;;  %s2814_s3 = inlined_call_operand.hbm [shape: f32[1,256,256], index: 3, kind: output, shape index: {}]  }
   0x1   :  { %v1533_v0 = vld [vmem:[%s2813_s2 + $0x70] sm:$0xf]  ;;  %v1818_v1 = vld [vmem:[%s2813_s2 + $0x74] sm:$0xf0]  ;;  %v1817_v5 = vld [vmem:[%s2813_s2 + $0x74] sm:$0xf] }
   0x2   :  { %v1597_v2 = vld [vmem:[%s2813_s2 + $0xf0] sm:$0xf]  ;;  %v1534_v3 = vor.u32 %v1818_v1, %v1533_v0  ;;  %v1834_v4 = vld [vmem:[%s2813_s2 + $0xf4] sm:$0xf0]  ;;  %v1535_v6 = vld [vmem:[%s2813_s2 + $0x78] sm:$0xf0] }
   0x3   :  { %v1598_v7 = vor.u32 %v1834_v4, %v1597_v2  ;;  %v1538_v8 = vor.u32 %v1817_v5, %v1535_v6  ;;  %v1833_v9 = vld [vmem:[%s2813_s2 + $0xf4] sm:$0xf]  ;;  %v1599_v10 = vld [vmem:[%s2813_s2 + $0xf8] sm:$0xf0]  ;;  %v1525_v11 = vld [vmem:[%s2813_s2 + $0x60] sm:$0xf] }
   0x4   :  { %288 = vmatpush.bf16.msra.mxu0 %v1534_v3  ;;  %v1602_v12 = vor.u32 %v1833_v9, %v1599_v10  ;;  %v1816_v13 = vld [vmem:[%s2813_s2 + $0x64] sm:$0xf0]  ;;  %v1589_v14 = vld [vmem:[%s2813_s2 + $0xe0] sm:$0xf]  ;;  %v1815_v18 = vld [vmem:[%s2813_s2 + $0x64] sm:$0xf] }
   0x5   :  { %v1832_v15 = vld [vmem:[%s2813_s2 + $0xe4] sm:$0xf0]  ;;  %317 = vmatpush.bf16.msra.mxu1 %v1598_v7  ;;  %346 = vmatpush.bf16.msra.mxu2 %v1538_v8  ;;  %v1526_v16 = vor.u32 %v1816_v13, %v1525_v11  ;;  %v1527_v19 = vld [vmem:[%s2813_s2 + $0x68] sm:$0xf0]  ;;  %v1831_v20 = vld [vmem:[%s2813_s2 + $0xe4] sm:$0xf] }
   0x6   :  { %v1590_v17 = vor.u32 %v1832_v15, %v1589_v14  ;;  %375 = vmatpush.bf16.msra.mxu3 %v1602_v12  ;;  %v1530_v21 = vor.u32 %v1815_v18, %v1527_v19  ;;  %v1591_v22 = vld [vmem:[%s2813_s2 + $0xe8] sm:$0xf0]  ;;  %v1517_v23 = vld [vmem:[%s2813_s2 + $0x50] sm:$0xf]  ;;  %v1814_v24 = vld [vmem:[%s2813_s2 + $0x54] sm:$0xf0] }
   0x7   :  { %v1594_v25 = vor.u32 %v1831_v20, %v1591_v22  ;;  %v1581_v26 = vld [vmem:[%s2813_s2 + $0xd0] sm:$0xf]  ;;  %v1830_v27 = vld [vmem:[%s2813_s2 + $0xd4] sm:$0xf0]  ;;  %v1813_v28 = vld [vmem:[%s2813_s2 + $0x54] sm:$0xf]  ;;  %v1518_v29 = vor.u32 %v1814_v24, %v1517_v23 }
   0x8   :  { %289 = vmatpush.bf16.msra.mxu0 %v1526_v16  ;;  %v1519_v30 = vld [vmem:[%s2813_s2 + $0x58] sm:$0xf0]  ;;  %v1829_v31 = vld [vmem:[%s2813_s2 + $0xd4] sm:$0xf]  ;;  %v1582_v33 = vor.u32 %v1830_v27, %v1581_v26  ;;  %v1509_v35 = vld [vmem:[%s2813_s2 + $0x40] sm:$0xf] }
   0x9   :  { %v1583_v32 = vld [vmem:[%s2813_s2 + $0xd8] sm:$0xf0]  ;;  %318 = vmatpush.bf16.msra.mxu1 %v1590_v17  ;;  %347 = vmatpush.bf16.msra.mxu2 %v1530_v21  ;;  %v1522_v34 = vor.u32 %v1813_v28, %v1519_v30  ;;  %v1812_v36 = vld [vmem:[%s2813_s2 + $0x44] sm:$0xf0]  ;;  %v1573_v37 = vld [vmem:[%s2813_s2 + $0xc0] sm:$0xf] }
   0xa   :  { %376 = vmatpush.bf16.msra.mxu3 %v1594_v25  ;;  %v1586_v38 = vor.u32 %v1829_v31, %v1583_v32  ;;  %v1828_v39 = vld [vmem:[%s2813_s2 + $0xc4] sm:$0xf0]  ;;  %v1811_v40 = vld [vmem:[%s2813_s2 + $0x44] sm:$0xf]  ;;  %v1511_v41 = vld [vmem:[%s2813_s2 + $0x48] sm:$0xf0]  ;;  %v1510_v44 = vor.u32 %v1812_v36, %v1509_v35 }
   0xb   :  { %v1827_v42 = vld [vmem:[%s2813_s2 + $0xc4] sm:$0xf]  ;;  %v1575_v43 = vld [vmem:[%s2813_s2 + $0xc8] sm:$0xf0]  ;;  %v1574_v45 = vor.u32 %v1828_v39, %v1573_v37  ;;  %v1514_v46 = vor.u32 %v1811_v40, %v1511_v41  ;;  %v1501_v47 = vld [vmem:[%s2813_s2 + $0x30] sm:$0xf] }
   0xc   :  { %290 = vmatpush.bf16.msra.mxu0 %v1518_v29  ;;  %v1810_v48 = vld [vmem:[%s2813_s2 + $0x34] sm:$0xf0]  ;;  %v1565_v49 = vld [vmem:[%s2813_s2 + $0xb0] sm:$0xf]  ;;  %v1578_v50 = vor.u32 %v1827_v42, %v1575_v43  ;;  %v1809_v52 = vld [vmem:[%s2813_s2 + $0x34] sm:$0xf] }
   0xd   :  { %319 = vmatpush.bf16.msra.mxu1 %v1582_v33  ;;  %348 = vmatpush.bf16.msra.mxu2 %v1522_v34  ;;  %v1826_v51 = vld [vmem:[%s2813_s2 + $0xb4] sm:$0xf0]  ;;  %v1503_v53 = vld [vmem:[%s2813_s2 + $0x38] sm:$0xf0]  ;;  %v1825_v54 = vld [vmem:[%s2813_s2 + $0xb4] sm:$0xf]  ;;  %v1502_v56 = vor.u32 %v1810_v48, %v1501_v47 }
   0xe   :  { %377 = vmatpush.bf16.msra.mxu3 %v1586_v38  ;;  %v1567_v55 = vld [vmem:[%s2813_s2 + $0xb8] sm:$0xf0]  ;;  %v1566_v57 = vor.u32 %v1826_v51, %v1565_v49  ;;  %v1506_v58 = vor.u32 %v1809_v52, %v1503_v53  ;;  %v1493_v59 = vld [vmem:[%s2813_s2 + $0x20] sm:$0xf]  ;;  %v1808_v60 = vld [vmem:[%s2813_s2 + $0x24] sm:$0xf0] }
   0xf   :  { %v1557_v61 = vld [vmem:[%s2813_s2 + $0xa0] sm:$0xf]  ;;  %v1570_v62 = vor.u32 %v1825_v54, %v1567_v55  ;;  %v1824_v63 = vld [vmem:[%s2813_s2 + $0xa4] sm:$0xf0]  ;;  %v1807_v0 = vld [vmem:[%s2813_s2 + $0x24] sm:$0xf]  ;;  %v1494_v4 = vor.u32 %v1808_v60, %v1493_v59 }
  0x10   :  { %291 = vmatpush.bf16.msra.mxu0 %v1510_v44  ;;  %v1495_v1 = vld [vmem:[%s2813_s2 + $0x28] sm:$0xf0]  ;;  %v1823_v2 = vld [vmem:[%s2813_s2 + $0xa4] sm:$0xf]  ;;  %v1558_v5 = vor.u32 %v1824_v63, %v1557_v61  ;;  %v1485_v7 = vld [vmem:[%s2813_s2 + $0x10] sm:$0xf] }
  0x11   :  { %320 = vmatpush.bf16.msra.mxu1 %v1574_v45  ;;  %349 = vmatpush.bf16.msra.mxu2 %v1514_v46  ;;  %v1559_v3 = vld [vmem:[%s2813_s2 + $0xa8] sm:$0xf0]  ;;  %v1498_v6 = vor.u32 %v1807_v0, %v1495_v1  ;;  %v1806_v8 = vld [vmem:[%s2813_s2 + $0x14] sm:$0xf0]  ;;  %v1549_v9 = vld [vmem:[%s2813_s2 + $0x90] sm:$0xf] }
  0x12   :  { %378 = vmatpush.bf16.msra.mxu3 %v1578_v50  ;;  %v1562_v10 = vor.u32 %v1823_v2, %v1559_v3  ;;  %v1822_v11 = vld [vmem:[%s2813_s2 + $0x94] sm:$0xf0]  ;;  %v1805_v12 = vld [vmem:[%s2813_s2 + $0x14] sm:$0xf]  ;;  %v1487_v13 = vld [vmem:[%s2813_s2 + $0x18] sm:$0xf0]  ;;  %v1486_v16 = vor.u32 %v1806_v8, %v1485_v7 }
  0x13   :  { %v1821_v14 = vld [vmem:[%s2813_s2 + $0x94] sm:$0xf]  ;;  %v1551_v15 = vld [vmem:[%s2813_s2 + $0x98] sm:$0xf0]  ;;  %v1477_v17 = vld [vmem:[%s2813_s2] sm:$0xf]  ;;  %v1550_v18 = vor.u32 %v1822_v11, %v1549_v9  ;;  %v1490_v19 = vor.u32 %v1805_v12, %v1487_v13 }
  0x14   :  { %292 = vmatpush.bf16.msra.mxu0 %v1502_v56  ;;  %v1804_v20 = vld [vmem:[%s2813_s2 + $0x4] sm:$0xf0]  ;;  %v1541_v21 = vld [vmem:[%s2813_s2 + $0x80] sm:$0xf] }
  0x15   :  { %321 = vmatpush.bf16.msra.mxu1 %v1566_v57  ;;  %350 = vmatpush.bf16.msra.mxu2 %v1506_v58 }
  0x16   :  { %379 = vmatpush.bf16.msra.mxu3 %v1570_v62 }
  0x18   :  { %293 = vmatpush.bf16.msra.mxu0 %v1494_v4 }
  0x19   :  { %322 = vmatpush.bf16.msra.mxu1 %v1558_v5  ;;  %351 = vmatpush.bf16.msra.mxu2 %v1498_v6 }
  0x1a   :  { %8 = vsyncpa [#allocation3], 0  ;;  %380 = vmatpush.bf16.msra.mxu3 %v1562_v10  ;;  %v1554_v22 = vor.u32 %v1821_v14, %v1551_v15  ;;  %v1820_v23 = vld [vmem:[%s2813_s2 + $0x84] sm:$0xf0]  ;;  %v1803_v24 = vld [vmem:[%s2813_s2 + $0x4] sm:$0xf]  ;;  %v1478_v28 = vor.u32 %v1804_v20, %v1477_v17 }
  0x1b   :  { %v1479_v25 = vld [vmem:[%s2813_s2 + $0x8] sm:$0xf0]  ;;  %v1819_v26 = vld [vmem:[%s2813_s2 + $0x84] sm:$0xf]  ;;  %v1445_v29 = vld [vmem:[%s2812_s1] sm:$0xf]  ;;  %v1542_v31 = vor.u32 %v1820_v23, %v1541_v21 }
  0x1c   :  { %v1543_v27 = vld [vmem:[%s2813_s2 + $0x88] sm:$0xf0]  ;;  %294 = vmatpush.bf16.msra.mxu0 %v1486_v16  ;;  %v1796_v30 = vld [vmem:[%s2812_s1 + $0x4] sm:$0xf0]  ;;  %v1482_v32 = vor.u32 %v1803_v24, %v1479_v25  ;;  %v1795_v33 = vld [vmem:[%s2812_s1 + $0x4] sm:$0xf] }
  0x1d   :  { %323 = vmatpush.bf16.msra.mxu1 %v1550_v18  ;;  %352 = vmatpush.bf16.msra.mxu2 %v1490_v19  ;;  %v1447_v34 = vld [vmem:[%s2812_s1 + $0x8] sm:$0xf0]  ;;  %v1546_v35 = vor.u32 %v1819_v26, %v1543_v27  ;;  %v1446_v36 = vor.u32 %v1796_v30, %v1445_v29  ;;  %v1469_v38 = vld [vmem:[%s2812_s1 + $0x30] sm:$0xf]  ;;  %v1802_v39 = vld [vmem:[%s2812_s1 + $0x34] sm:$0xf0] }
  0x1e   :  { %381 = vmatpush.bf16.msra.mxu3 %v1554_v22  ;;  %v1450_v37 = vor.u32 %v1795_v33, %v1447_v34  ;;  %v1470_v40 = vor.u32 %v1802_v39, %v1469_v38  ;;  %v1461_v41 = vld [vmem:[%s2812_s1 + $0x20] sm:$0xf]  ;;  %v1800_v42 = vld [vmem:[%s2812_s1 + $0x24] sm:$0xf0]  ;;  %v1453_v44 = vld [vmem:[%s2812_s1 + $0x10] sm:$0xf] }
  0x1f   :  { %v1462_v43 = vor.u32 %v1800_v42, %v1461_v41  ;;  %v1798_v45 = vld [vmem:[%s2812_s1 + $0x14] sm:$0xf0]  ;;  %v1797_v46 = vld [vmem:[%s2812_s1 + $0x14] sm:$0xf]  ;;  %v1455_v47 = vld [vmem:[%s2812_s1 + $0x18] sm:$0xf0] }
  0x20   :  { %295 = vmatpush.bf16.msra.mxu0 %v1478_v28  ;;  %v1454_v48 = vor.u32 %v1798_v45, %v1453_v44  ;;  %v1458_v49 = vor.u32 %v1797_v46, %v1455_v47  ;;  %v1801_v50 = vld [vmem:[%s2812_s1 + $0x34] sm:$0xf]  ;;  %v1471_v51 = vld [vmem:[%s2812_s1 + $0x38] sm:$0xf0]  ;;  %v1799_v53 = vld [vmem:[%s2812_s1 + $0x24] sm:$0xf] }
  0x21   :  { %324 = vmatpush.bf16.msra.mxu1 %v1542_v31  ;;  %353 = vmatpush.bf16.msra.mxu2 %v1482_v32  ;;  %v1474_v52 = vor.u32 %v1801_v50, %v1471_v51  ;;  %v1463_v54 = vld [vmem:[%s2812_s1 + $0x28] sm:$0xf0]  ;;  %vm766_vm0 = vcmask 523264   ;;  %s1431_s22 = sshll.u32 %s2814_s3, 4  ;;  %s1993_s23 = smov 256   ;;  %s1432_s22 = int_to_ptr.hbm [resolvable:$true] %s1431_s22 }
  0x22   :  { %382 = vmatpush.bf16.msra.mxu3 %v1546_v35  ;;  %v1466_v55 = vor.u32 %v1799_v53, %v1463_v54  ;;  %s1994_s24 = smov 16  }
  0x23   :  { %296 = vmatmul.bf16.vlgmr.msra.gmra.mxu0 %v1446_v36 }
  0x24   :  { %325 = vmatmul.bf16.vlgmr.msra.gmra.mxu1 %v1450_v37  ;;  %354 = vmatmul.bf16.vlgmr.msra.gmra.mxu2 %v1446_v36 }
  0x25   :  { %383 = vmatmul.bf16.vlgmr.msra.gmra.mxu3 %v1450_v37  ;;  %1187 = vmatpush.bf16.msrb.mxu2 %v1470_v40 }
  0x26   :  { %1276 = vmatpush.bf16.msrb.mxu3 %v1474_v52 }
  0x29   :  { %1188 = vmatpush.bf16.msrb.mxu2 %v1462_v43 }
  0x2a   :  { %1277 = vmatpush.bf16.msrb.mxu3 %v1466_v55 }
  0x2d   :  { %1189 = vmatpush.bf16.msrb.mxu2 %v1454_v48 }
  0x2e   :  { %1278 = vmatpush.bf16.msrb.mxu3 %v1458_v49 }
  0x31   :  { %1190 = vmatpush.bf16.msrb.mxu2 %v1446_v36 }
  0x32   :  { %1279 = vmatpush.bf16.msrb.mxu3 %v1450_v37 }
  0x33   :  { %301 = vmatmul.bf16.gmra.mxu0 %v1454_v48 }
  0x34   :  { %330 = vmatmul.bf16.gmra.mxu1 %v1458_v49  ;;  %359 = vmatmul.bf16.gmra.mxu2 %v1454_v48 }
  0x35   :  { %388 = vmatmul.bf16.gmra.mxu3 %v1458_v49 }
  0x43   :  { %306 = vmatmul.bf16.gmra.mxu0 %v1462_v43 }
  0x44   :  { %335 = vmatmul.bf16.gmra.mxu1 %v1466_v55  ;;  %364 = vmatmul.bf16.gmra.mxu2 %v1462_v43 }
  0x45   :  { %393 = vmatmul.bf16.gmra.mxu3 %v1466_v55 }
  0x53   :  { %311 = vmatmul.bf16.gmra.mxu0 %v1470_v40 }
  0x54   :  { %340 = vmatmul.bf16.gmra.mxu1 %v1474_v52  ;;  %369 = vmatmul.bf16.gmra.mxu2 %v1470_v40 }
  0x55   :  { %398 = vmatmul.bf16.gmra.mxu3 %v1474_v52 }
  0xa0   :  { %v297_v56 = vpop.f32.mrf.mxu0 }
  0xa1   :  { %v326_v57 = vpop.f32.mrf.mxu1 }
  0xa2   :  { %v2255_v58 = vadd.f32 %v326_v57, %v297_v56 }
  0xa4   :  { %v404_v57 = vmul.f32 0.2, %v2255_v58  ;;  %v1763_v58 = vld [vmem:[%s2811_s0 + $0x4] sm:$0xf] }
  0xa7   :  { %v355_v59 = vpop.f32.mrf.mxu2 }
  0xa8   :  { %v384_v60 = vpop.f32.mrf.mxu3  ;;  %v299_v61 = vpop.f32.mrf.mxu0 }
  0xa9   :  { %v2257_v62 = vadd.f32 %v384_v60, %v355_v59  ;;  %v328_v63 = vpop.f32.mrf.mxu1 }
  0xaa   :  { %v329_v51 = vadd.f32 %v328_v63, %v299_v61  ;;  %v1764_v61 = vld [vmem:[%s2811_s0 + $0x4] sm:$0xf0] }
  0xac   :  { %v406_v55 = vmul.f32 0.2, %v329_v51 }
  0xaf   :  { %v2259_v0 = vpop.f32.mrf.mxu2 }
  0xb0   :  { %v386_v1 = vpop.f32.mrf.mxu3  ;;  %v302_v2 = vpop.f32.mrf.mxu0 }
  0xb1   :  { %v331_v3 = vpop.f32.mrf.mxu1  ;;  %v387_v59 = vadd.f32 %v386_v1, %v2259_v0  ;;  %v1607_v0 = vld [vmem:[%s2811_s0 + $0x8] sm:$0xf0] }
  0xb2   :  { %v332_v44 = vadd.f32 %v331_v3, %v302_v2  ;;  %v420_v2 = vpack.c.bf16 %v406_v55, %v404_v57  ;;  %v1605_v3 = vld [vmem:[%s2811_s0] sm:$0xf]  ;;  %v1610_v1 = vor.u32 %v1763_v58, %v1607_v0  ;;  %v1780_v58 = vld [vmem:[%s2811_s0 + $0x84] sm:$0xf0]  ;;  %v1779_v0 = vld [vmem:[%s2811_s0 + $0x84] sm:$0xf] }
  0xb3   :  { %v407_v63 = vmul.f32 0.2, %v387_v59  ;;  %v1663_v59 = vld [vmem:[%s2811_s0 + $0x78] sm:$0xf0] }
  0xb4   :  { %v408_v48 = vmul.f32 0.2, %v332_v44 }
  0xb7   :  { %v360_v4 = vpop.f32.mrf.mxu2 }
  0xb8   :  { %v389_v5 = vpop.f32.mrf.mxu3  ;;  %v304_v6 = vpop.f32.mrf.mxu0 }
  0xb9   :  { %v333_v7 = vpop.f32.mrf.mxu1  ;;  %v390_v53 = vadd.f32 %v389_v5, %v360_v4  ;;  %v405_v4 = vmul.f32 0.2, %v2257_v62  ;;  %v1606_v5 = vor.u32 %v1764_v61, %v1605_v3  ;;  %v1766_v62 = vld [vmem:[%s2811_s0 + $0x14] sm:$0xf0] }
  0xba   :  { %v334_v41 = vadd.f32 %v333_v7, %v304_v6  ;;  %v1613_v7 = vld [vmem:[%s2811_s0 + $0x10] sm:$0xf] }
  0xbb   :  { %v409_v56 = vmul.f32 0.2, %v390_v53  ;;  %v421_v6 = vpack.c.bf16 %v407_v63, %v405_v4  ;;  %v1778_v53 = vld [vmem:[%s2811_s0 + $0x74] sm:$0xf0] }
  0xbc   :  { %v410_v46 = vmul.f32 0.2, %v334_v41  ;;  %v1655_v41 = vld [vmem:[%s2811_s0 + $0x68] sm:$0xf0] }
  0xbe   :  { %v422_v52 = vpack.c.bf16 %v410_v46, %v408_v48 }
  0xbf   :  { %v362_v8 = vpop.f32.mrf.mxu2 }
  0xc0   :  { %v391_v9 = vpop.f32.mrf.mxu3  ;;  %v307_v10 = vpop.f32.mrf.mxu0 }
  0xc1   :  { %v336_v11 = vpop.f32.mrf.mxu1  ;;  %v392_v49 = vadd.f32 %v391_v9, %v362_v8  ;;  %v1614_v8 = vor.u32 %v1766_v62, %v1613_v7  ;;  %v1765_v9 = vld [vmem:[%s2811_s0 + $0x14] sm:$0xf] }
  0xc2   :  { %v337_v32 = vadd.f32 %v336_v11, %v307_v10  ;;  %v1615_v10 = vld [vmem:[%s2811_s0 + $0x18] sm:$0xf0] }
  0xc3   :  { %v411_v54 = vmul.f32 0.2, %v392_v49  ;;  %v1618_v11 = vor.u32 %v1765_v9, %v1615_v10 }
  0xc4   :  { %v412_v38 = vmul.f32 0.2, %v337_v32  ;;  %v1773_v32 = vld [vmem:[%s2811_s0 + $0x54] sm:$0xf] }
  0xc5   :  { %v423_v60 = vpack.c.bf16 %v411_v54, %v409_v56  ;;  %v1777_v54 = vld [vmem:[%s2811_s0 + $0x74] sm:$0xf] }
  0xc7   :  { %v365_v12 = vpop.f32.mrf.mxu2 }
  0xc8   :  { %v394_v13 = vpop.f32.mrf.mxu3  ;;  %v309_v14 = vpop.f32.mrf.mxu0 }
  0xc9   :  { %v338_v15 = vpop.f32.mrf.mxu1  ;;  %v395_v43 = vadd.f32 %v394_v13, %v365_v12  ;;  %v1621_v12 = vld [vmem:[%s2811_s0 + $0x20] sm:$0xf]  ;;  %v1768_v13 = vld [vmem:[%s2811_s0 + $0x24] sm:$0xf0] }
  0xca   :  { %v339_v28 = vadd.f32 %v338_v15, %v309_v14  ;;  %v1622_v14 = vor.u32 %v1768_v13, %v1621_v12  ;;  %v1767_v15 = vld [vmem:[%s2811_s0 + $0x24] sm:$0xf] }
  0xcb   :  { %v413_v47 = vmul.f32 0.2, %v395_v43 }
  0xcc   :  { %v414_v35 = vmul.f32 0.2, %v339_v28  ;;  %v1639_v28 = vld [vmem:[%s2811_s0 + $0x48] sm:$0xf0] }
  0xce   :  { %v424_v42 = vpack.c.bf16 %v414_v35, %v412_v38  ;;  %v1775_v38 = vld [vmem:[%s2811_s0 + $0x64] sm:$0xf] }
  0xcf   :  { %v367_v16 = vpop.f32.mrf.mxu2 }
  0xd0   :  { %v396_v17 = vpop.f32.mrf.mxu3  ;;  %v312_v18 = vpop.f32.mrf.mxu0 }
  0xd1   :  { %v341_v19 = vpop.f32.mrf.mxu1  ;;  %v397_v39 = vadd.f32 %v396_v17, %v367_v16  ;;  %v1623_v16 = vld [vmem:[%s2811_s0 + $0x28] sm:$0xf0] }
  0xd2   :  { %v342_v21 = vadd.f32 %v341_v19, %v312_v18  ;;  %v1626_v17 = vor.u32 %v1767_v15, %v1623_v16  ;;  %v1629_v18 = vld [vmem:[%s2811_s0 + $0x30] sm:$0xf]  ;;  %v1770_v19 = vld [vmem:[%s2811_s0 + $0x34] sm:$0xf0] }
  0xd3   :  { %v415_v45 = vmul.f32 0.2, %v397_v39  ;;  %v1677_v15 = vld [vmem:[%s2811_s0 + $0x90] sm:$0xf]  ;;  %v1782_v16 = vld [vmem:[%s2811_s0 + $0x94] sm:$0xf0] }
  0xd4   :  { %v416_v26 = vmul.f32 0.2, %v342_v21  ;;  %v1769_v21 = vld [vmem:[%s2811_s0 + $0x34] sm:$0xf] }
  0xd5   :  { %v425_v50 = vpack.c.bf16 %v415_v45, %v413_v47 }
  0xd7   :  { %v370_v20 = vpop.f32.mrf.mxu2 }
  0xd8   :  { %v399_v22 = vpop.f32.mrf.mxu3  ;;  %v314_v23 = vpop.f32.mrf.mxu0 }
  0xd9   :  { %v343_v24 = vpop.f32.mrf.mxu1  ;;  %v400_v30 = vadd.f32 %v399_v22, %v370_v20  ;;  %v1630_v20 = vor.u32 %v1770_v19, %v1629_v18  ;;  %v1631_v22 = vld [vmem:[%s2811_s0 + $0x38] sm:$0xf0]  ;;  %v1678_v19 = vor.u32 %v1782_v16, %v1677_v15 }
  0xda   :  { %v344_v25 = vadd.f32 %v343_v24, %v314_v23  ;;  %v1634_v23 = vor.u32 %v1769_v21, %v1631_v22  ;;  %v1637_v24 = vld [vmem:[%s2811_s0 + $0x40] sm:$0xf]  ;;  %v1679_v18 = vld [vmem:[%s2811_s0 + $0x98] sm:$0xf0] }
  0xdb   :  { %v417_v36 = vmul.f32 0.2, %v400_v30  ;;  %v1645_v30 = vld [vmem:[%s2811_s0 + $0x50] sm:$0xf] }
  0xdc   :  { %v418_v27 = vmul.f32 0.2, %v344_v25  ;;  %v1772_v25 = vld [vmem:[%s2811_s0 + $0x44] sm:$0xf0] }
  0xde   :  { %v426_v29 = vpack.c.bf16 %v418_v27, %v416_v26  ;;  %v1638_v26 = vor.u32 %v1772_v25, %v1637_v24  ;;  %v1771_v27 = vld [vmem:[%s2811_s0 + $0x44] sm:$0xf] }
  0xdf   :  { %v372_v31 = vpop.f32.mrf.mxu2 }
  0xe0   :  { %v401_v33 = vpop.f32.mrf.mxu3  ;;  %592 = vmatpush.bf16.xpose.msrb.mxu0 %v426_v29  ;;  %v1642_v29 = vor.u32 %v1771_v27, %v1639_v28 }
  0xe1   :  { %v402_v34 = vadd.f32 %v401_v33, %v372_v31  ;;  %v1774_v31 = vld [vmem:[%s2811_s0 + $0x54] sm:$0xf0] }
  0xe2   :  { %v1646_v33 = vor.u32 %v1774_v31, %v1645_v30 }
  0xe3   :  { %v419_v37 = vmul.f32 0.2, %v402_v34  ;;  %v1647_v34 = vld [vmem:[%s2811_s0 + $0x58] sm:$0xf0] }
  0xe4   :  { %v1650_v35 = vor.u32 %v1773_v32, %v1647_v34 }
  0xe5   :  { %v427_v40 = vpack.c.bf16 %v419_v37, %v417_v36  ;;  %v1653_v36 = vld [vmem:[%s2811_s0 + $0x60] sm:$0xf]  ;;  %v1776_v37 = vld [vmem:[%s2811_s0 + $0x64] sm:$0xf0] }
  0xe7   :  { %681 = vmatpush.bf16.xpose.msrb.mxu1 %v427_v40  ;;  %v1654_v40 = vor.u32 %v1776_v37, %v1653_v36  ;;  %v1685_v36 = vld [vmem:[%s2811_s0 + $0xa0] sm:$0xf]  ;;  %v1784_v37 = vld [vmem:[%s2811_s0 + $0xa4] sm:$0xf0] }
  0xe8   :  { %593 = vmatpush.bf16.xpose.msrb.mxu0 %v424_v42  ;;  %v1658_v42 = vor.u32 %v1775_v38, %v1655_v41  ;;  %v1783_v38 = vld [vmem:[%s2811_s0 + $0xa4] sm:$0xf] }
  0xef   :  { %682 = vmatpush.bf16.xpose.msrb.mxu1 %v425_v50 }
  0xf0   :  { %594 = vmatpush.bf16.xpose.msrb.mxu0 %v422_v52  ;;  %v1661_v52 = vld [vmem:[%s2811_s0 + $0x70] sm:$0xf] }
  0xf1   :  { %v1662_v57 = vor.u32 %v1778_v53, %v1661_v52 }
  0xf7   :  { %683 = vmatpush.bf16.xpose.msrb.mxu1 %v423_v60  ;;  %v1666_v60 = vor.u32 %v1777_v54, %v1663_v59  ;;  %v1785_v59 = vld [vmem:[%s2811_s0 + $0xb4] sm:$0xf] }
  0xf8   :  { %595 = vmatpush.bf16.xpose.msrb.mxu0 %v420_v2 }
  0xff   :  { %684 = vmatpush.bf16.xpose.msrb.mxu1 %v421_v6  ;;  %596 = vmatmul.bf16.vlgmr.msrb.gmra.mxu0 %v1606_v5  ;;  %v1669_v6 = vld [vmem:[%s2811_s0 + $0x80] sm:$0xf] }
 0x100   :  { %v1670_v62 = vor.u32 %v1780_v58, %v1669_v6 }
 0x106   :  { %685 = vmatmul.bf16.vlgmr.msrb.gmra.mxu1 %v1610_v1 }
 0x10f   :  { %601 = vmatmul.bf16.gmra.mxu0 %v1614_v8  ;;  %v1671_v8 = vld [vmem:[%s2811_s0 + $0x88] sm:$0xf0] }
 0x110   :  { %v1674_v9 = vor.u32 %v1779_v0, %v1671_v8 }
 0x116   :  { %690 = vmatmul.bf16.gmra.mxu1 %v1618_v11 }
 0x11f   :  { %606 = vmatmul.bf16.gmra.mxu0 %v1622_v14 }
 0x126   :  { %695 = vmatmul.bf16.gmra.mxu1 %v1626_v17  ;;  %v1781_v17 = vld [vmem:[%s2811_s0 + $0x94] sm:$0xf] }
 0x127   :  { %v1682_v21 = vor.u32 %v1781_v17, %v1679_v18 }
 0x12f   :  { %611 = vmatmul.bf16.gmra.mxu0 %v1630_v20 }
 0x136   :  { %700 = vmatmul.bf16.gmra.mxu1 %v1634_v23 }
 0x13f   :  { %616 = vmatmul.bf16.gmra.mxu0 %v1638_v26 }
 0x146   :  { %705 = vmatmul.bf16.gmra.mxu1 %v1642_v29 }
 0x14f   :  { %621 = vmatmul.bf16.gmra.mxu0 %v1646_v33 }
 0x156   :  { %710 = vmatmul.bf16.gmra.mxu1 %v1650_v35 }
 0x15f   :  { %626 = vmatmul.bf16.gmra.mxu0 %v1654_v40  ;;  %v1687_v40 = vld [vmem:[%s2811_s0 + $0xa8] sm:$0xf0] }
 0x166   :  { %715 = vmatmul.bf16.gmra.mxu1 %v1658_v42  ;;  %v1690_v42 = vor.u32 %v1783_v38, %v1687_v40 }
 0x16f   :  { %631 = vmatmul.bf16.gmra.mxu0 %v1662_v57  ;;  %v1693_v57 = vld [vmem:[%s2811_s0 + $0xb0] sm:$0xf] }
 0x176   :  { %720 = vmatmul.bf16.gmra.mxu1 %v1666_v60 }
 0x17c   :  { %v597_v39 = vpop.f32.mrf.mxu0 }
 0x17f   :  { %636 = vmatmul.bf16.gmra.mxu0 %v1670_v62 }
 0x183   :  { %v686_v43 = vpop.f32.mrf.mxu1 }
 0x184   :  { %v2348_v44 = vadd.f32 %v686_v43, %v597_v39  ;;  %v599_v45 = vpop.f32.mrf.mxu0  ;;  %v1686_v39 = vor.u32 %v1784_v37, %v1685_v36 }
 0x186   :  { %v767_v46 = vsel %vm766_vm0, %v2348_v44, -inf  ;;  %725 = vmatmul.bf16.gmra.mxu1 %v1674_v9 }
 0x187   :  { %768 = vmax.xlane.f32.xlu0 %v767_v46 }
 0x18b   :  { %v688_v47 = vpop.f32.mrf.mxu1 }
 0x18c   :  { %v2352_v48 = vadd.f32 %v688_v47, %v599_v45  ;;  %v602_v49 = vpop.f32.mrf.mxu0 }
 0x18e   :  { %v770_v50 = vsel %vm766_vm0, %v2352_v48, -inf }
 0x18f   :  { %771 = vmax.xlane.f32.xlu0 %v770_v50  ;;  %641 = vmatmul.bf16.gmra.mxu0 %v1678_v19 }
 0x193   :  { %v691_v51 = vpop.f32.mrf.mxu1 }
 0x194   :  { %v2365_v55 = vadd.f32 %v691_v51, %v602_v49  ;;  %v604_v56 = vpop.f32.mrf.mxu0 }
 0x196   :  { %v773_v2 = vsel %vm766_vm0, %v2365_v55, -inf  ;;  %730 = vmatmul.bf16.gmra.mxu1 %v1682_v21  ;;  %v1701_v21 = vld [vmem:[%s2811_s0 + $0xc0] sm:$0xf] }
 0x197   :  { %774 = vmax.xlane.f32.xlu1 %v773_v2  ;;  %v1695_v2 = vld [vmem:[%s2811_s0 + $0xb8] sm:$0xf0] }
 0x19b   :  { %v693_v3 = vpop.f32.mrf.mxu1 }
 0x19c   :  { %v2372_v61 = vadd.f32 %v693_v3, %v604_v56  ;;  %v607_v63 = vpop.f32.mrf.mxu0 }
 0x19e   :  { %v776_v4 = vsel %vm766_vm0, %v2372_v61, -inf }
 0x19f   :  { %777 = vmax.xlane.f32.xlu1 %v776_v4  ;;  %646 = vmatmul.bf16.gmra.mxu0 %v1686_v39 }
 0x1a3   :  { %v696_v5 = vpop.f32.mrf.mxu1 }
 0x1a4   :  { %v2385_v1 = vadd.f32 %v696_v5, %v607_v63  ;;  %v609_v7 = vpop.f32.mrf.mxu0  ;;  %v1698_v63 = vor.u32 %v1785_v59, %v1695_v2 }
 0x1a6   :  { %v779_v10 = vsel %vm766_vm0, %v2385_v1, -inf  ;;  %735 = vmatmul.bf16.gmra.mxu1 %v1690_v42 }
 0x1a7   :  { %780 = vmax.xlane.f32.xlu2 %v779_v10 }
 0x1ab   :  { %v698_v11 = vpop.f32.mrf.mxu1 }
 0x1ac   :  { %v2392_v12 = vadd.f32 %v698_v11, %v609_v7  ;;  %v612_v13 = vpop.f32.mrf.mxu0 }
 0x1ae   :  { %v782_v14 = vsel %vm766_vm0, %v2392_v12, -inf }
 0x1af   :  { %783 = vmax.xlane.f32.xlu2 %v782_v14 }
 0x1b3   :  { %v701_v20 = vpop.f32.mrf.mxu1 }
 0x1b4   :  { %v2408_v22 = vadd.f32 %v701_v20, %v612_v13  ;;  %v614_v24 = vpop.f32.mrf.mxu0 }
 0x1b6   :  { %v785_v23 = vsel %vm766_vm0, %v2408_v22, -inf  ;;  %740 = vmatmul.bf16.gmra.mxu1 %v1698_v63 }
 0x1b7   :  { %786 = vmax.xlane.f32.xlu0 %v785_v23 }
 0x1bb   :  { %v703_v25 = vpop.f32.mrf.mxu1 }
 0x1bc   :  { %v2412_v26 = vadd.f32 %v703_v25, %v614_v24  ;;  %v617_v28 = vpop.f32.mrf.mxu0  ;;  %v1787_v25 = vld [vmem:[%s2811_s0 + $0xc4] sm:$0xf] }
 0x1be   :  { %v788_v27 = vsel %vm766_vm0, %v2412_v26, -inf }
 0x1bf   :  { %789 = vmax.xlane.f32.xlu1 %v788_v27  ;;  %v1703_v27 = vld [vmem:[%s2811_s0 + $0xc8] sm:$0xf0] }
 0x1c3   :  { %v706_v29 = vpop.f32.mrf.mxu1 }
 0x1c4   :  { %v2416_v30 = vadd.f32 %v706_v29, %v617_v28  ;;  %v619_v32 = vpop.f32.mrf.mxu0  ;;  %v1706_v28 = vor.u32 %v1787_v25, %v1703_v27 }
 0x1c6   :  { %v791_v31 = vsel %vm766_vm0, %v2416_v30, -inf  ;;  %745 = vmatmul.bf16.gmra.mxu1 %v1706_v28 }
 0x1c7   :  { %792 = vmax.xlane.f32.xlu1 %v791_v31 }
 0x1cb   :  { %v708_v33 = vpop.f32.mrf.mxu1 }
 0x1cc   :  { %v622_v43 = vpop.f32.mrf.mxu0  ;;  %v2438_v54 = vadd.f32 %v708_v33, %v619_v32 }
 0x1ce   :  { %v794_v4 = vsel %vm766_vm0, %v2438_v54, -inf }
 0x1d4   :  { %v624_v51 = vpop.f32.mrf.mxu0 }
 0x1dc   :  { %v627_v7 = vpop.f32.mrf.mxu0 }
 0x1e4   :  { %v629_v17 = vpop.f32.mrf.mxu0 }
 0x1fa   :  { %v769_v34 = vpop.xlane.xlu0 %768 }
 0x1fb   :  { %v863_v35 = vsub.f32 %v2348_v44, %v769_v34  ;;  %v711_v44 = vpop.f32.mrf.mxu1 }
 0x1fc   :  { %v2459_v6 = vadd.f32 %v711_v44, %v622_v43 }
 0x1fd   :  { %v895_v41 = vmul.f32 1.442695, %v863_v35  ;;  %v632_v35 = vpop.f32.mrf.mxu0 }
 0x1fe   :  { %v797_v8 = vsel %vm766_vm0, %v2459_v6, -inf }
 0x1ff   :  { %1838 = vpow2.f32 %v895_v41 }
 0x202   :  { %v772_v45 = vpop.xlane.xlu0 %771 }
 0x203   :  { %v864_v46 = vsub.f32 %v2352_v48, %v772_v45  ;;  %v713_v52 = vpop.f32.mrf.mxu1  ;;  %v1786_v48 = vld [vmem:[%s2811_s0 + $0xb4] sm:$0xf0] }
 0x204   :  { %v1694_v60 = vor.u32 %v1786_v48, %v1693_v57  ;;  %v2468_v14 = vadd.f32 %v713_v52, %v624_v51  ;;  %v1789_v51 = vld [vmem:[%s2811_s0 + $0xd4] sm:$0xf]  ;;  %v1711_v52 = vld [vmem:[%s2811_s0 + $0xd8] sm:$0xf0] }
 0x205   :  { %v2434_v47 = vpop.eup %1838  ;;  %v897_v49 = vmul.f32 1.442695, %v864_v46  ;;  %v634_v44 = vpop.f32.mrf.mxu0  ;;  %v1709_v46 = vld [vmem:[%s2811_s0 + $0xd0] sm:$0xf] }
 0x206   :  { %v959_v50 = vsel %vm766_vm0, %v2434_v47, 0.0  ;;  %651 = vmatmul.bf16.gmra.mxu0 %v1694_v60  ;;  %v800_v20 = vsel %vm766_vm0, %v2468_v14, -inf }
 0x207   :  { %1840 = vpow2.f32 %v897_v49  ;;  %960 = vadd.xlane.f32.xlu2 %v959_v50 }
 0x20a   :  { %v775_v53 = vpop.xlane.xlu1 %774 }
 0x20b   :  { %v865_v56 = vsub.f32 %v2365_v55, %v775_v53  ;;  %v716_v62 = vpop.f32.mrf.mxu1  ;;  %v1714_v53 = vor.u32 %v1789_v51, %v1711_v52 }
 0x20c   :  { %v2483_v23 = vadd.f32 %v716_v62, %v627_v7  ;;  %v1791_v62 = vld [vmem:[%s2811_s0 + $0xe4] sm:$0xf] }
 0x20d   :  { %v2453_v3 = vpop.eup %1840  ;;  %v899_v55 = vmul.f32 1.442695, %v865_v56  ;;  %750 = vmatmul.bf16.gmra.mxu1 %v1714_v53  ;;  %v637_v63 = vpop.f32.mrf.mxu0 }
 0x20e   :  { %v962_v5 = vsel %vm766_vm0, %v2453_v3, 0.0  ;;  %v803_v32 = vsel %vm766_vm0, %v2483_v23, -inf }
 0x20f   :  { %1842 = vpow2.f32 %v899_v55  ;;  %795 = vmax.xlane.f32.xlu2 %v794_v4  ;;  %963 = vadd.xlane.f32.xlu0 %v962_v5 }
 0x212   :  { %v778_v58 = vpop.xlane.xlu1 %777 }
 0x213   :  { %v866_v0 = vsub.f32 %v2372_v61, %v778_v58  ;;  %v718_v18 = vpop.f32.mrf.mxu1  ;;  %v1717_v58 = vld [vmem:[%s2811_s0 + $0xe0] sm:$0xf] }
 0x214   :  { %v2498_v39 = vadd.f32 %v718_v18, %v629_v17 }
 0x215   :  { %v2464_v9 = vpop.eup %1842  ;;  %v901_v10 = vmul.f32 1.442695, %v866_v0  ;;  %v1792_v0 = vld [vmem:[%s2811_s0 + $0xe4] sm:$0xf0]  ;;  %v639_v17 = vpop.f32.mrf.mxu0 }
 0x216   :  { %v965_v11 = vsel %vm766_vm0, %v2464_v9, 0.0  ;;  %v806_v42 = vsel %vm766_vm0, %v2498_v39, -inf }
 0x217   :  { %1844 = vpow2.f32 %v901_v10  ;;  %798 = vmax.xlane.f32.xlu2 %v797_v8  ;;  %966 = vadd.xlane.f32.xlu0 %v965_v11  ;;  %v1719_v8 = vld [vmem:[%s2811_s0 + $0xe8] sm:$0xf0] }
 0x21a   :  { %v781_v13 = vpop.xlane.xlu2 %780 }
 0x21b   :  { %v867_v15 = vsub.f32 %v2385_v1, %v781_v13  ;;  %v1788_v1 = vld [vmem:[%s2811_s0 + $0xc4] sm:$0xf0]  ;;  %v721_v36 = vpop.f32.mrf.mxu1  ;;  %v1718_v13 = vor.u32 %v1792_v0, %v1717_v58 }
 0x21c   :  { %v1702_v24 = vor.u32 %v1788_v1, %v1701_v21  ;;  %v2513_v49 = vadd.f32 %v721_v36, %v632_v35 }
 0x21d   :  { %v2471_v61 = vpop.eup %1844  ;;  %v903_v16 = vmul.f32 1.442695, %v867_v15  ;;  %v1722_v15 = vor.u32 %v1791_v62, %v1719_v8  ;;  %v642_v25 = vpop.f32.mrf.mxu0 }
 0x21e   :  { %v968_v19 = vsel %vm766_vm0, %v2471_v61, 0.0  ;;  %656 = vmatmul.bf16.gmra.mxu0 %v1702_v24  ;;  %v809_v48 = vsel %vm766_vm0, %v2513_v49, -inf }
 0x21f   :  { %1846 = vpow2.f32 %v903_v16  ;;  %969 = vadd.xlane.f32.xlu1 %v968_v19  ;;  %801 = vmax.xlane.f32.xlu0 %v800_v20 }
 0x220   :  { %755 = vmatmul.bf16.gmra.mxu1 %v1722_v15 }
 0x222   :  { %v784_v29 = vpop.xlane.xlu2 %783 }
 0x223   :  { %v868_v31 = vsub.f32 %v2392_v12, %v784_v29  ;;  %v723_v45 = vpop.f32.mrf.mxu1 }
 0x224   :  { %v2528_v55 = vadd.f32 %v723_v45, %v634_v44 }
 0x225   :  { %v2494_v33 = vpop.eup %1846  ;;  %v905_v34 = vmul.f32 1.442695, %v868_v31 }
 0x226   :  { %v971_v37 = vsel %vm766_vm0, %v2494_v33, 0.0  ;;  %v812_v7 = vsel %vm766_vm0, %v2528_v55, -inf }
 0x227   :  { %1848 = vpow2.f32 %v905_v34  ;;  %972 = vadd.xlane.f32.xlu1 %v971_v37  ;;  %804 = vmax.xlane.f32.xlu0 %v803_v32  ;;  %v644_v37 = vpop.f32.mrf.mxu0 }
 0x22a   :  { %v787_v38 = vpop.xlane.xlu0 %786 }
 0x22b   :  { %v869_v12 = vsub.f32 %v2408_v22, %v787_v38  ;;  %v1790_v22 = vld [vmem:[%s2811_s0 + $0xd4] sm:$0xf0]  ;;  %v726_v4 = vpop.f32.mrf.mxu1 }
 0x22c   :  { %v1710_v50 = vor.u32 %v1790_v22, %v1709_v46  ;;  %v2549_v16 = vadd.f32 %v726_v4, %v637_v63  ;;  %v1725_v22 = vld [vmem:[%s2811_s0 + $0xf0] sm:$0xf] }
 0x22d   :  { %v2501_v40 = vpop.eup %1848  ;;  %v907_v41 = vmul.f32 1.442695, %v869_v12 }
 0x22e   :  { %v974_v43 = vsel %vm766_vm0, %v2501_v40, 0.0  ;;  %661 = vmatmul.bf16.gmra.mxu0 %v1710_v50  ;;  %v815_v19 = vsel %vm766_vm0, %v2549_v16, -inf  ;;  %v1793_v50 = vld [vmem:[%s2811_s0 + $0xf4] sm:$0xf] }
 0x22f   :  { %1850 = vpow2.f32 %v907_v41  ;;  %807 = vmax.xlane.f32.xlu1 %v806_v42  ;;  %975 = vadd.xlane.f32.xlu2 %v974_v43 }
 0x232   :  { %v790_v56 = vpop.xlane.xlu1 %789 }
 0x233   :  { %v870_v57 = vsub.f32 %v2412_v26, %v790_v56  ;;  %v728_v18 = vpop.f32.mrf.mxu1 }
 0x234   :  { %v2557_v1 = vadd.f32 %v728_v18, %v639_v17 }
 0x235   :  { %v2524_v59 = vpop.eup %1850  ;;  %v909_v60 = vmul.f32 1.442695, %v870_v57  ;;  %v647_v57 = vpop.f32.mrf.mxu0 }
 0x236   :  { %v977_v2 = vsel %vm766_vm0, %v2524_v59, 0.0  ;;  %v818_v24 = vsel %vm766_vm0, %v2557_v1, -inf }
 0x237   :  { %1852 = vpow2.f32 %v909_v60  ;;  %810 = vmax.xlane.f32.xlu1 %v809_v48  ;;  %978 = vadd.xlane.f32.xlu2 %v977_v2 }
 0x23a   :  { %v793_v5 = vpop.xlane.xlu1 %792 }
 0x23b   :  { %v871_v26 = vsub.f32 %v2416_v30, %v793_v5  ;;  %v731_v27 = vpop.f32.mrf.mxu1 }
 0x23c   :  { %v2561_v28 = vadd.f32 %v731_v27, %v642_v25 }
 0x23d   :  { %v2545_v30 = vpop.eup %1852  ;;  %v911_v10 = vmul.f32 1.442695, %v871_v26 }
 0x23e   :  { %v980_v11 = vsel %vm766_vm0, %v2545_v30, 0.0  ;;  %666 = vmatmul.bf16.gmra.mxu0 %v1718_v13  ;;  %v821_v29 = vsel %vm766_vm0, %v2561_v28, -inf }
 0x23f   :  { %1854 = vpow2.f32 %v911_v10  ;;  %981 = vadd.xlane.f32.xlu0 %v980_v11  ;;  %813 = vmax.xlane.f32.xlu2 %v812_v7  ;;  %v649_v7 = vpop.f32.mrf.mxu0 }
 0x243   :  { %v733_v38 = vpop.f32.mrf.mxu1 }
 0x244   :  { %v2592_v11 = vadd.f32 %v733_v38, %v644_v37 }
 0x245   :  { %v2553_v20 = vpop.eup %1854 }
 0x246   :  { %v983_v21 = vsel %vm766_vm0, %v2553_v20, 0.0 }
 0x247   :  { %984 = vadd.xlane.f32.xlu0 %v983_v21  ;;  %816 = vmax.xlane.f32.xlu2 %v815_v19  ;;  %v824_v21 = vsel %vm766_vm0, %v2592_v11, -inf }
 0x24b   :  { %v736_v48 = vpop.f32.mrf.mxu1 }
 0x24f   :  { %819 = vmax.xlane.f32.xlu0 %v818_v24 }
 0x253   :  { %v738_v62 = vpop.f32.mrf.mxu1 }
 0x257   :  { %822 = vmax.xlane.f32.xlu0 %v821_v29 }
 0x25b   :  { %v741_v29 = vpop.f32.mrf.mxu1 }
 0x27a   :  { %v961_v31 = vpop.xlane.xlu2 %960 }
 0x27b   :  { %1856 = vrcp.f32 %v961_v31 }
 0x281   :  { %v1857_v12 = vpop.eup %1856 }
 0x282   :  { %v796_v32 = vpop.xlane.xlu2 %795  ;;  %v964_v34 = vpop.xlane.xlu0 %963  ;;  %v1087_v42 = vmul.f32 %v1857_v12, %v2434_v47 }
 0x283   :  { %v872_v35 = vsub.f32 %v2438_v54, %v796_v32  ;;  %1858 = vrcp.f32 %v964_v34  ;;  %v1794_v54 = vld [vmem:[%s2811_s0 + $0xf4] sm:$0xf0]  ;;  %v652_v27 = vpop.f32.mrf.mxu0 }
 0x284   :  { %v1726_v47 = vor.u32 %v1794_v54, %v1725_v22  ;;  %v743_v54 = vpop.f32.mrf.mxu1 }
 0x285   :  { %v913_v36 = vmul.f32 1.442695, %v872_v35 }
 0x286   :  { %671 = vmatmul.bf16.gmra.mxu0 %v1726_v47 }
 0x287   :  { %1860 = vpow2.f32 %v913_v36 }
 0x289   :  { %v1859_v41 = vpop.eup %1858 }
 0x28a   :  { %v1088_v43 = vmul.f32 %v1859_v41, %v2453_v3  ;;  %v799_v44 = vpop.xlane.xlu2 %798  ;;  %v967_v45 = vpop.xlane.xlu0 %966  ;;  %v1727_v3 = vld [vmem:[%s2811_s0 + $0xf8] sm:$0xf0]  ;;  %s1992_s0 = smov [#allocation2]  }
 0x28b   :  { %v873_v46 = vsub.f32 %v2459_v6, %v799_v44  ;;  %v1730_v53 = vor.u32 %v1793_v50, %v1727_v3  ;;  %v654_v22 = vpop.f32.mrf.mxu0  ;;  %s1429_s19 = sshll.u32 %s1992_s0, 4  ;;  %s1430_s19 = int_to_ptr.vmem [resolvable:$true] %s1429_s19 }
 0x28c   :  { %v1119_v51 = vpack.c.bf16 %v1088_v43, %v1087_v42 }
 0x28d   :  { %v2581_v52 = vpop.eup %1860  ;;  %v915_v6 = vmul.f32 1.442695, %v873_v46  ;;  %760 = vmatmul.bf16.gmra.mxu1 %v1730_v53 }
 0x28e   :  { %1731 = vmatmul.msk.bf16.vlgmr.msrb.gmra.mxu2 %vm766_vm0, %v1119_v51  ;;  %1747 = vmatmul.msk.bf16.vlgmr.msrb.gmra.mxu3 %vm766_vm0, %v1119_v51  ;;  %v986_v56 = vsel %vm766_vm0, %v2581_v52, 0.0 }
 0x28f   :  { %1862 = vpow2.f32 %v915_v6  ;;  %987 = vadd.xlane.f32.xlu1 %v986_v56 }
 0x290   :  { %1864 = vrcp.f32 %v967_v45 }
 0x292   :  { %v970_v60 = vpop.xlane.xlu1 %969  ;;  %v802_v2 = vpop.xlane.xlu0 %801 }
 0x293   :  { %1866 = vrcp.f32 %v970_v60  ;;  %v874_v63 = vsub.f32 %v2468_v14, %v802_v2 }
 0x295   :  { %v2588_v4 = vpop.eup %1862  ;;  %v917_v5 = vmul.f32 1.442695, %v874_v63 }
 0x296   :  { %v989_v26 = vsel %vm766_vm0, %v2588_v4, 0.0  ;;  %v1865_v58 = vpop.eup %1864 }
 0x297   :  { %1868 = vpow2.f32 %v917_v5  ;;  %990 = vadd.xlane.f32.xlu1 %v989_v26  ;;  %v1089_v13 = vmul.f32 %v1865_v58, %v2464_v9  ;;  %v2605_v9 = vadd.f32 %v736_v48, %v647_v57  ;;  %v746_v57 = vpop.f32.mrf.mxu1 }
 0x299   :  { %v1867_v0 = vpop.eup %1866  ;;  %v827_v31 = vsel %vm766_vm0, %v2605_v9, -inf }
 0x29a   :  { %v973_v8 = vpop.xlane.xlu1 %972  ;;  %v805_v10 = vpop.xlane.xlu0 %804  ;;  %v1090_v14 = vmul.f32 %v1867_v0, %v2471_v61 }
 0x29b   :  { %v875_v15 = vsub.f32 %v2483_v23, %v805_v10  ;;  %v657_v56 = vpop.f32.mrf.mxu0 }
 0x29c   :  { %v1120_v17 = vpack.c.bf16 %v1090_v14, %v1089_v13 }
 0x29d   :  { %v2597_v18 = vpop.eup %1868  ;;  %v919_v19 = vmul.f32 1.442695, %v875_v15 }
 0x29e   :  { %1732 = vmatmul.msk.bf16.gmra.mxu2 %vm766_vm0, %v1120_v17  ;;  %1748 = vmatmul.msk.bf16.gmra.mxu3 %vm766_vm0, %v1120_v17  ;;  %v992_v24 = vsel %vm766_vm0, %v2597_v18, 0.0 }
 0x29f   :  { %1870 = vpow2.f32 %v919_v19  ;;  %825 = vmax.xlane.f32.xlu1 %v824_v21  ;;  %993 = vadd.xlane.f32.xlu2 %v992_v24 }
 0x2a0   :  { %1872 = vrcp.f32 %v973_v8 }
 0x2a2   :  { %v808_v61 = vpop.xlane.xlu1 %807  ;;  %v976_v23 = vpop.xlane.xlu2 %975 }
 0x2a3   :  { %v876_v25 = vsub.f32 %v2498_v39, %v808_v61  ;;  %1874 = vrcp.f32 %v976_v23  ;;  %v2614_v39 = vadd.f32 %v738_v62, %v649_v7 }
 0x2a5   :  { %v2610_v32 = vpop.eup %1870  ;;  %v921_v34 = vmul.f32 1.442695, %v876_v25 }
 0x2a6   :  { %v995_v35 = vsel %vm766_vm0, %v2610_v32, 0.0  ;;  %v1873_v36 = vpop.eup %1872 }
 0x2a7   :  { %1876 = vpow2.f32 %v921_v34  ;;  %828 = vmax.xlane.f32.xlu1 %v827_v31  ;;  %996 = vadd.xlane.f32.xlu2 %v995_v35  ;;  %v1091_v41 = vmul.f32 %v1873_v36, %v2494_v33  ;;  %v830_v33 = vsel %vm766_vm0, %v2614_v39, -inf }
 0x2a9   :  { %v1875_v37 = vpop.eup %1874 }
 0x2aa   :  { %v811_v38 = vpop.xlane.xlu1 %810  ;;  %v979_v12 = vpop.xlane.xlu2 %978  ;;  %v1092_v42 = vmul.f32 %v1875_v37, %v2501_v40  ;;  %v2627_v40 = vadd.f32 %v741_v29, %v652_v27 }
 0x2ab   :  { %v877_v43 = vsub.f32 %v2513_v49, %v811_v38 }
 0x2ac   :  { %v1121_v44 = vpack.c.bf16 %v1092_v42, %v1091_v41  ;;  %v833_v3 = vsel %vm766_vm0, %v2627_v40, -inf }
 0x2ad   :  { %v2619_v45 = vpop.eup %1876  ;;  %v923_v46 = vmul.f32 1.442695, %v877_v43 }
 0x2ae   :  { %1733 = vmatmul.msk.bf16.gmra.mxu2 %vm766_vm0, %v1121_v44  ;;  %1749 = vmatmul.msk.bf16.gmra.mxu3 %vm766_vm0, %v1121_v44  ;;  %v998_v50 = vsel %vm766_vm0, %v2619_v45, 0.0 }
 0x2af   :  { %1878 = vpow2.f32 %v923_v46  ;;  %999 = vadd.xlane.f32.xlu0 %v998_v50  ;;  %831 = vmax.xlane.f32.xlu2 %v830_v33 }
 0x2b0   :  { %1880 = vrcp.f32 %v979_v12 }
 0x2b2   :  { %v814_v49 = vpop.xlane.xlu2 %813  ;;  %v982_v51 = vpop.xlane.xlu0 %981 }
 0x2b3   :  { %v878_v47 = vsub.f32 %v2528_v55, %v814_v49  ;;  %1882 = vrcp.f32 %v982_v51  ;;  %v2636_v55 = vadd.f32 %v743_v54, %v654_v22 }
 0x2b5   :  { %v2632_v6 = vpop.eup %1878  ;;  %v925_v53 = vmul.f32 1.442695, %v878_v47  ;;  %v836_v10 = vsel %vm766_vm0, %v2636_v55, -inf }
 0x2b6   :  { %v1001_v48 = vsel %vm766_vm0, %v2632_v6, 0.0  ;;  %v1881_v60 = vpop.eup %1880 }
 0x2b7   :  { %1884 = vpow2.f32 %v925_v53  ;;  %1002 = vadd.xlane.f32.xlu0 %v1001_v48  ;;  %834 = vmax.xlane.f32.xlu2 %v833_v3  ;;  %v1093_v26 = vmul.f32 %v1881_v60, %v2524_v59  ;;  %v659_v59 = vpop.f32.mrf.mxu0 }
 0x2b9   :  { %v1883_v2 = vpop.eup %1882 }
 0x2ba   :  { %v817_v63 = vpop.xlane.xlu2 %816  ;;  %v985_v5 = vpop.xlane.xlu0 %984  ;;  %v1094_v58 = vmul.f32 %v1883_v2, %v2545_v30 }
 0x2bb   :  { %v879_v0 = vsub.f32 %v2549_v16, %v817_v63  ;;  %v748_v30 = vpop.f32.mrf.mxu1  ;;  %v2649_v16 = vadd.f32 %v746_v57, %v657_v56 }
 0x2bc   :  { %v1122_v7 = vpack.c.bf16 %v1094_v58, %v1093_v26  ;;  %v2658_v61 = vadd.f32 %v748_v30, %v659_v59 }
 0x2bd   :  { %v2641_v62 = vpop.eup %1884  ;;  %v927_v8 = vmul.f32 1.442695, %v879_v0  ;;  %v839_v17 = vsel %vm766_vm0, %v2649_v16, -inf }
 0x2be   :  { %1734 = vmatmul.msk.bf16.gmra.mxu2 %vm766_vm0, %v1122_v7  ;;  %1750 = vmatmul.msk.bf16.gmra.mxu3 %vm766_vm0, %v1122_v7  ;;  %v1004_v13 = vsel %vm766_vm0, %v2641_v62, 0.0 }
 0x2bf   :  { %1886 = vpow2.f32 %v927_v8  ;;  %837 = vmax.xlane.f32.xlu0 %v836_v10  ;;  %1005 = vadd.xlane.f32.xlu1 %v1004_v13  ;;  %v662_v23 = vpop.f32.mrf.mxu0 }
 0x2c2   :  { %v820_v14 = vpop.xlane.xlu0 %819 }
 0x2c3   :  { %v880_v15 = vsub.f32 %v2557_v1, %v820_v14  ;;  %v751_v25 = vpop.f32.mrf.mxu1  ;;  %v842_v1 = vsel %vm766_vm0, %v2658_v61, -inf }
 0x2c4   :  { %v2667_v36 = vadd.f32 %v751_v25, %v662_v23 }
 0x2c5   :  { %v2654_v19 = vpop.eup %1886  ;;  %v929_v21 = vmul.f32 1.442695, %v880_v15 }
 0x2c6   :  { %v1007_v24 = vsel %vm766_vm0, %v2654_v19, 0.0  ;;  %v845_v12 = vsel %vm766_vm0, %v2667_v36, -inf }
 0x2c7   :  { %1888 = vpow2.f32 %v929_v21  ;;  %840 = vmax.xlane.f32.xlu0 %v839_v17  ;;  %1008 = vadd.xlane.f32.xlu1 %v1007_v24  ;;  %v664_v37 = vpop.f32.mrf.mxu0 }
 0x2ca   :  { %v823_v27 = vpop.xlane.xlu0 %822 }
 0x2cb   :  { %v881_v29 = vsub.f32 %v2561_v28, %v823_v27  ;;  %v753_v38 = vpop.f32.mrf.mxu1 }
 0x2cc   :  { %v2675_v42 = vadd.f32 %v753_v38, %v664_v37 }
 0x2cd   :  { %v2663_v31 = vpop.eup %1888  ;;  %v931_v34 = vmul.f32 1.442695, %v881_v29 }
 0x2ce   :  { %v1010_v35 = vsel %vm766_vm0, %v2663_v31, 0.0  ;;  %v848_v43 = vsel %vm766_vm0, %v2675_v42, -inf }
 0x2cf   :  { %1890 = vpow2.f32 %v931_v34  ;;  %843 = vmax.xlane.f32.xlu1 %v842_v1  ;;  %1011 = vadd.xlane.f32.xlu2 %v1010_v35  ;;  %v667_v44 = vpop.f32.mrf.mxu0 }
 0x2d0   :  { %1892 = vrcp.f32 %v985_v5 }
 0x2d3   :  { %v756_v46 = vpop.f32.mrf.mxu1 }
 0x2d4   :  { %v2679_v22 = vadd.f32 %v756_v46, %v667_v44 }
 0x2d5   :  { %v2671_v28 = vpop.eup %1890 }
 0x2d6   :  { %v1013_v41 = vsel %vm766_vm0, %v2671_v28, 0.0  ;;  %v851_v54 = vsel %vm766_vm0, %v2679_v22, -inf  ;;  %v1893_v33 = vpop.eup %1892 }
 0x2d7   :  { %846 = vmax.xlane.f32.xlu1 %v845_v12  ;;  %1014 = vadd.xlane.f32.xlu2 %v1013_v41  ;;  %v1095_v47 = vmul.f32 %v1893_v33, %v2553_v20  ;;  %v669_v17 = vpop.f32.mrf.mxu0 }
 0x2db   :  { %v758_v21 = vpop.f32.mrf.mxu1 }
 0x2dc   :  { %v2702_v38 = vadd.f32 %v758_v21, %v669_v17 }
 0x2de   :  { %v854_v33 = vsel %vm766_vm0, %v2702_v38, -inf }
 0x2df   :  { %849 = vmax.xlane.f32.xlu2 %v848_v43 }
 0x2e7   :  { %852 = vmax.xlane.f32.xlu2 %v851_v54 }
 0x302   :  { %v988_v50 = vpop.xlane.xlu1 %987 }
 0x303   :  { %1894 = vrcp.f32 %v988_v50  ;;  %v672_v54 = vpop.f32.mrf.mxu0 }
 0x309   :  { %v1895_v49 = vpop.eup %1894 }
 0x30a   :  { %v991_v51 = vpop.xlane.xlu1 %990  ;;  %v1096_v3 = vmul.f32 %v1895_v49, %v2581_v52  ;;  %v761_v50 = vpop.f32.mrf.mxu1 }
 0x30b   :  { %1896 = vrcp.f32 %v991_v51 }
 0x30c   :  { %v1123_v53 = vpack.c.bf16 %v1096_v3, %v1095_v47 }
 0x30e   :  { %1735 = vmatmul.msk.bf16.gmra.mxu2 %vm766_vm0, %v1123_v53  ;;  %1751 = vmatmul.msk.bf16.gmra.mxu3 %vm766_vm0, %v1123_v53 }
 0x311   :  { %v1192_v56 = vpop.f32.mrf.mxu2  ;;  %v1281_v57 = vpop.f32.mrf.mxu3 }
 0x312   :  { %1361 = vst [vmem:[#allocation2] sm:$0xff] %v1192_v56  ;;  %v826_v48 = vpop.xlane.xlu1 %825  ;;  %v994_v60 = vpop.xlane.xlu2 %993 }
 0x313   :  { %1362 = vst [vmem:[#allocation2 + $0x8] sm:$0xff] %v1281_v57  ;;  %v882_v2 = vsub.f32 %v2592_v11, %v826_v48  ;;  %1898 = vrcp.f32 %v994_v60  ;;  %v1897_v5 = vpop.eup %1896 }
 0x314   :  { %v1097_v7 = vmul.f32 %v1897_v5, %v2588_v4 }
 0x315   :  { %v933_v63 = vmul.f32 1.442695, %v882_v2  ;;  %v674_v2 = vpop.f32.mrf.mxu0 }
 0x317   :  { %1900 = vpow2.f32 %v933_v63  ;;  %v763_v63 = vpop.f32.mrf.mxu1 }
 0x319   :  { %v1899_v20 = vpop.eup %1898  ;;  %v1194_v52 = vpop.f32.mrf.mxu2 }
 0x31a   :  { %v1283_v26 = vpop.f32.mrf.mxu3  ;;  %1363 = vst [vmem:[#allocation2 + $0x10] sm:$0xff] %v1194_v52  ;;  %v829_v58 = vpop.xlane.xlu1 %828  ;;  %v1098_v8 = vmul.f32 %v1899_v20, %v2597_v18 }
 0x31b   :  { %v997_v0 = vpop.xlane.xlu2 %996  ;;  %1364 = vst [vmem:[#allocation2 + $0x18] sm:$0xff] %v1283_v26  ;;  %v883_v10 = vsub.f32 %v2605_v9, %v829_v58  ;;  %v2724_v58 = vadd.f32 %v763_v63, %v674_v2 }
 0x31c   :  { %v1124_v13 = vpack.c.bf16 %v1098_v8, %v1097_v7 }
 0x31d   :  { %v2691_v59 = vpop.eup %1900  ;;  %v935_v11 = vmul.f32 1.442695, %v883_v10 }
 0x31e   :  { %1736 = vmatmul.msk.bf16.gmra.mxu2 %vm766_vm0, %v1124_v13  ;;  %1752 = vmatmul.msk.bf16.gmra.mxu3 %vm766_vm0, %v1124_v13  ;;  %v1016_v30 = vsel %vm766_vm0, %v2691_v59, 0.0 }
 0x31f   :  { %1902 = vpow2.f32 %v935_v11  ;;  %1017 = vadd.xlane.f32.xlu0 %v1016_v30  ;;  %v860_v30 = vsel %vm766_vm0, %v2724_v58, -inf }
 0x320   :  { %1904 = vrcp.f32 %v997_v0 }
 0x321   :  { %v1197_v4 = vpop.f32.mrf.mxu2 }
 0x322   :  { %v1286_v14 = vpop.f32.mrf.mxu3  ;;  %1365 = vst [vmem:[#allocation2 + $0x20] sm:$0xff] %v1197_v4  ;;  %v1000_v15 = vpop.xlane.xlu0 %999 }
 0x323   :  { %v832_v18 = vpop.xlane.xlu2 %831  ;;  %1366 = vst [vmem:[#allocation2 + $0x28] sm:$0xff] %v1286_v14  ;;  %1906 = vrcp.f32 %v1000_v15 }
 0x324   :  { %v884_v9 = vsub.f32 %v2614_v39, %v832_v18 }
 0x325   :  { %v2698_v24 = vpop.eup %1902 }
 0x326   :  { %v937_v23 = vmul.f32 1.442695, %v884_v9  ;;  %v1019_v25 = vsel %vm766_vm0, %v2698_v24, 0.0  ;;  %v1905_v27 = vpop.eup %1904 }
 0x327   :  { %1020 = vadd.xlane.f32.xlu0 %v1019_v25  ;;  %v1099_v39 = vmul.f32 %v1905_v27, %v2610_v32 }
 0x328   :  { %1908 = vpow2.f32 %v937_v23 }
 0x329   :  { %v1907_v29 = vpop.eup %1906  ;;  %v1199_v1 = vpop.f32.mrf.mxu2 }
 0x32a   :  { %v1288_v34 = vpop.f32.mrf.mxu3  ;;  %1367 = vst [vmem:[#allocation2 + $0x30] sm:$0xff] %v1199_v1  ;;  %v1003_v37 = vpop.xlane.xlu0 %1002  ;;  %v1100_v12 = vmul.f32 %v1907_v29, %v2619_v45  ;;  %v2715_v45 = vadd.f32 %v761_v50, %v672_v54 }
 0x32b   :  { %v835_v35 = vpop.xlane.xlu2 %834  ;;  %1368 = vst [vmem:[#allocation2 + $0x38] sm:$0xff] %v1288_v34 }
 0x32c   :  { %v885_v41 = vsub.f32 %v2627_v40, %v835_v35  ;;  %v1125_v43 = vpack.c.bf16 %v1100_v12, %v1099_v39  ;;  %v857_v53 = vsel %vm766_vm0, %v2715_v45, -inf }
 0x32e   :  { %v2707_v44 = vpop.eup %1908  ;;  %v939_v46 = vmul.f32 1.442695, %v885_v41  ;;  %1737 = vmatmul.msk.bf16.gmra.mxu2 %vm766_vm0, %v1125_v43  ;;  %1753 = vmatmul.msk.bf16.gmra.mxu3 %vm766_vm0, %v1125_v43 }
 0x32f   :  { %v1022_v32 = vsel %vm766_vm0, %v2707_v44, 0.0  ;;  %855 = vmax.xlane.f32.xlu0 %v854_v33 }
 0x330   :  { %1910 = vpow2.f32 %v939_v46  ;;  %1023 = vadd.xlane.f32.xlu1 %v1022_v32 }
 0x331   :  { %1912 = vrcp.f32 %v1003_v37  ;;  %v1202_v40 = vpop.f32.mrf.mxu2 }
 0x332   :  { %v1291_v49 = vpop.f32.mrf.mxu3  ;;  %1369 = vst [vmem:[#allocation2 + $0x40] sm:$0xff] %v1202_v40  ;;  %v1006_v51 = vpop.xlane.xlu1 %1005 }
 0x333   :  { %v838_v47 = vpop.xlane.xlu0 %837  ;;  %1370 = vst [vmem:[#allocation2 + $0x48] sm:$0xff] %v1291_v49  ;;  %1914 = vrcp.f32 %v1006_v51 }
 0x334   :  { %v886_v3 = vsub.f32 %v2636_v55, %v838_v47 }
 0x336   :  { %v2720_v56 = vpop.eup %1910  ;;  %v941_v57 = vmul.f32 1.442695, %v886_v3 }
 0x337   :  { %v1025_v48 = vsel %vm766_vm0, %v2720_v56, 0.0  ;;  %v1913_v60 = vpop.eup %1912  ;;  %858 = vmax.xlane.f32.xlu0 %v857_v53 }
 0x338   :  { %1916 = vpow2.f32 %v941_v57  ;;  %1026 = vadd.xlane.f32.xlu1 %v1025_v48  ;;  %v1101_v0 = vmul.f32 %v1913_v60, %v2632_v6 }
 0x339   :  { %v1915_v5 = vpop.eup %1914  ;;  %v1204_v20 = vpop.f32.mrf.mxu2 }
 0x33a   :  { %v1293_v52 = vpop.f32.mrf.mxu3  ;;  %1371 = vst [vmem:[#allocation2 + $0x50] sm:$0xff] %v1204_v20  ;;  %v1009_v55 = vpop.xlane.xlu1 %1008  ;;  %v1102_v7 = vmul.f32 %v1915_v5, %v2641_v62 }
 0x33b   :  { %v841_v26 = vpop.xlane.xlu0 %840  ;;  %1372 = vst [vmem:[#allocation2 + $0x58] sm:$0xff] %v1293_v52 }
 0x33c   :  { %v887_v8 = vsub.f32 %v2649_v16, %v841_v26  ;;  %v1126_v10 = vpack.c.bf16 %v1102_v7, %v1101_v0 }
 0x33e   :  { %v2729_v13 = vpop.eup %1916  ;;  %v943_v11 = vmul.f32 1.442695, %v887_v8  ;;  %1738 = vmatmul.msk.bf16.gmra.mxu2 %vm766_vm0, %v1126_v10  ;;  %1754 = vmatmul.msk.bf16.gmra.mxu3 %vm766_vm0, %v1126_v10 }
 0x33f   :  { %v1028_v4 = vsel %vm766_vm0, %v2729_v13, 0.0 }
 0x340   :  { %1918 = vpow2.f32 %v943_v11  ;;  %861 = vmax.xlane.f32.xlu1 %v860_v30  ;;  %1029 = vadd.xlane.f32.xlu2 %v1028_v4 }
 0x341   :  { %1920 = vrcp.f32 %v1009_v55  ;;  %v1207_v6 = vpop.f32.mrf.mxu2 }
 0x342   :  { %v1296_v62 = vpop.f32.mrf.mxu3  ;;  %1373 = vst [vmem:[#allocation2 + $0x60] sm:$0xff] %v1207_v6  ;;  %v844_v16 = vpop.xlane.xlu1 %843 }
 0x343   :  { %v1012_v14 = vpop.xlane.xlu2 %1011  ;;  %1374 = vst [vmem:[#allocation2 + $0x68] sm:$0xff] %v1296_v62  ;;  %v888_v18 = vsub.f32 %v2658_v61, %v844_v16 }
 0x344   :  { %1922 = vrcp.f32 %v1012_v14 }
 0x345   :  { %v945_v9 = vmul.f32 1.442695, %v888_v18 }
 0x346   :  { %v2738_v15 = vpop.eup %1918 }
 0x347   :  { %v1031_v17 = vsel %vm766_vm0, %v2738_v15, 0.0  ;;  %v1921_v21 = vpop.eup %1920  ;;  %1924 = vpow2.f32 %v945_v9 }
 0x348   :  { %1032 = vadd.xlane.f32.xlu2 %v1031_v17  ;;  %v1103_v29 = vmul.f32 %v1921_v21, %v2654_v19 }
 0x349   :  { %v1209_v25 = vpop.f32.mrf.mxu2 }
 0x34a   :  { %v1923_v23 = vpop.eup %1922  ;;  %v1298_v27 = vpop.f32.mrf.mxu3  ;;  %1375 = vst [vmem:[#allocation2 + $0x70] sm:$0xff] %v1209_v25 }
 0x34b   :  { %v1104_v1 = vmul.f32 %v1923_v23, %v2663_v31  ;;  %v847_v34 = vpop.xlane.xlu1 %846  ;;  %v1015_v61 = vpop.xlane.xlu2 %1014  ;;  %1376 = vst [vmem:[#allocation2 + $0x78] sm:$0xff] %v1298_v27 }
 0x34c   :  { %v889_v35 = vsub.f32 %v2667_v36, %v847_v34 }
 0x34d   :  { %v1127_v37 = vpack.c.bf16 %v1104_v1, %v1103_v29  ;;  %v2745_v39 = vpop.eup %1924 }
 0x34e   :  { %v947_v12 = vmul.f32 1.442695, %v889_v35  ;;  %v1034_v41 = vsel %vm766_vm0, %v2745_v39, 0.0 }
 0x34f   :  { %1739 = vmatmul.msk.bf16.gmra.mxu2 %vm766_vm0, %v1127_v37  ;;  %1755 = vmatmul.msk.bf16.gmra.mxu3 %vm766_vm0, %v1127_v37 }
 0x350   :  { %1926 = vpow2.f32 %v947_v12  ;;  %1035 = vadd.xlane.f32.xlu0 %v1034_v41 }
 0x353   :  { %v850_v19 = vpop.xlane.xlu2 %849 }
 0x354   :  { %v890_v31 = vsub.f32 %v2675_v42, %v850_v19 }
 0x356   :  { %v2752_v43 = vpop.eup %1926  ;;  %v949_v46 = vmul.f32 1.442695, %v890_v31 }
 0x357   :  { %v1037_v36 = vsel %vm766_vm0, %v2752_v43, 0.0 }
 0x358   :  { %1928 = vpow2.f32 %v949_v46  ;;  %1038 = vadd.xlane.f32.xlu1 %v1037_v36 }
 0x35b   :  { %v853_v54 = vpop.xlane.xlu2 %852 }
 0x35c   :  { %v891_v50 = vsub.f32 %v2679_v22, %v853_v54 }
 0x35e   :  { %v2757_v33 = vpop.eup %1928  ;;  %v951_v32 = vmul.f32 1.442695, %v891_v50 }
 0x35f   :  { %v1040_v40 = vsel %vm766_vm0, %v2757_v33, 0.0 }
 0x360   :  { %1930 = vpow2.f32 %v951_v32  ;;  %1041 = vadd.xlane.f32.xlu2 %v1040_v40 }
 0x361   :  { %1932 = vrcp.f32 %v1015_v61 }
 0x366   :  { %v2761_v42 = vpop.eup %1930 }
 0x367   :  { %v1043_v49 = vsel %vm766_vm0, %v2761_v42, 0.0  ;;  %v1933_v22 = vpop.eup %1932 }
 0x368   :  { %1044 = vadd.xlane.f32.xlu0 %v1043_v49  ;;  %v1105_v60 = vmul.f32 %v1933_v22, %v2671_v28 }
 0x391   :  { %v1212_v51 = vpop.f32.mrf.mxu2  ;;  %v1301_v47 = vpop.f32.mrf.mxu3 }
 0x392   :  { %1377 = vst [vmem:[#allocation2 + $0x80] sm:$0xff] %v1212_v51  ;;  %v1018_v3 = vpop.xlane.xlu0 %1017 }
 0x393   :  { %1378 = vst [vmem:[#allocation2 + $0x88] sm:$0xff] %v1301_v47  ;;  %1934 = vrcp.f32 %v1018_v3 }
 0x399   :  { %v1935_v53 = vpop.eup %1934  ;;  %v1214_v57 = vpop.f32.mrf.mxu2 }
 0x39a   :  { %v1303_v48 = vpop.f32.mrf.mxu3  ;;  %v1106_v2 = vmul.f32 %v1935_v53, %v2691_v59  ;;  %1379 = vst [vmem:[#allocation2 + $0x90] sm:$0xff] %v1214_v57  ;;  %v1021_v63 = vpop.xlane.xlu0 %1020 }
 0x39b   :  { %1380 = vst [vmem:[#allocation2 + $0x98] sm:$0xff] %v1303_v48  ;;  %1936 = vrcp.f32 %v1021_v63 }
 0x39c   :  { %v1128_v5 = vpack.c.bf16 %v1106_v2, %v1105_v60 }
 0x39e   :  { %1740 = vmatmul.msk.bf16.gmra.mxu2 %vm766_vm0, %v1128_v5  ;;  %1756 = vmatmul.msk.bf16.gmra.mxu3 %vm766_vm0, %v1128_v5 }
 0x3a1   :  { %v1217_v20 = vpop.f32.mrf.mxu2  ;;  %v1937_v59 = vpop.eup %1936 }
 0x3a2   :  { %v1306_v52 = vpop.f32.mrf.mxu3  ;;  %1381 = vst [vmem:[#allocation2 + $0xa0] sm:$0xff] %v1217_v20  ;;  %v856_v26 = vpop.xlane.xlu0 %855  ;;  %v1107_v11 = vmul.f32 %v1937_v59, %v2698_v24 }
 0x3a3   :  { %v1024_v55 = vpop.xlane.xlu1 %1023  ;;  %1382 = vst [vmem:[#allocation2 + $0xa8] sm:$0xff] %v1306_v52  ;;  %v892_v28 = vsub.f32 %v2702_v38, %v856_v26 }
 0x3a4   :  { %1938 = vrcp.f32 %v1024_v55 }
 0x3a5   :  { %v953_v0 = vmul.f32 1.442695, %v892_v28 }
 0x3a7   :  { %1940 = vpow2.f32 %v953_v0 }
 0x3a9   :  { %v1219_v8 = vpop.f32.mrf.mxu2 }
 0x3aa   :  { %v1939_v7 = vpop.eup %1938  ;;  %v1308_v10 = vpop.f32.mrf.mxu3  ;;  %1383 = vst [vmem:[#allocation2 + $0xb0] sm:$0xff] %v1219_v8 }
 0x3ab   :  { %v1108_v30 = vmul.f32 %v1939_v7, %v2707_v44  ;;  %v1027_v4 = vpop.xlane.xlu1 %1026  ;;  %v859_v6 = vpop.xlane.xlu0 %858  ;;  %1384 = vst [vmem:[#allocation2 + $0xb8] sm:$0xff] %v1308_v10 }
 0x3ac   :  { %v893_v62 = vsub.f32 %v2715_v45, %v859_v6 }
 0x3ad   :  { %v1129_v16 = vpack.c.bf16 %v1108_v30, %v1107_v11  ;;  %v2773_v14 = vpop.eup %1940 }
 0x3ae   :  { %v955_v38 = vmul.f32 1.442695, %v893_v62  ;;  %v1046_v18 = vsel %vm766_vm0, %v2773_v14, 0.0 }
 0x3af   :  { %1741 = vmatmul.msk.bf16.gmra.mxu2 %vm766_vm0, %v1129_v16  ;;  %1757 = vmatmul.msk.bf16.gmra.mxu3 %vm766_vm0, %v1129_v16 }
 0x3b0   :  { %1942 = vpow2.f32 %v955_v38  ;;  %1047 = vadd.xlane.f32.xlu1 %v1046_v18 }
 0x3b1   :  { %1944 = vrcp.f32 %v1027_v4  ;;  %v1222_v24 = vpop.f32.mrf.mxu2 }
 0x3b2   :  { %v1311_v44 = vpop.f32.mrf.mxu3  ;;  %1385 = vst [vmem:[#allocation2 + $0xc0] sm:$0xff] %v1222_v24 }
 0x3b3   :  { %v862_v9 = vpop.xlane.xlu1 %861  ;;  %v1030_v17 = vpop.xlane.xlu2 %1029  ;;  %1386 = vst [vmem:[#allocation2 + $0xc8] sm:$0xff] %v1311_v44 }
 0x3b4   :  { %v894_v45 = vsub.f32 %v2724_v58, %v862_v9  ;;  %1946 = vrcp.f32 %v1030_v17 }
 0x3b6   :  { %v2780_v21 = vpop.eup %1942  ;;  %v957_v23 = vmul.f32 1.442695, %v894_v45 }
 0x3b7   :  { %v1049_v25 = vsel %vm766_vm0, %v2780_v21, 0.0  ;;  %v1945_v27 = vpop.eup %1944 }
 0x3b8   :  { %1948 = vpow2.f32 %v957_v23  ;;  %1050 = vadd.xlane.f32.xlu2 %v1049_v25  ;;  %v1109_v61 = vmul.f32 %v1945_v27, %v2720_v56 }
 0x3b9   :  { %v1224_v1 = vpop.f32.mrf.mxu2 }
 0x3ba   :  { %v1947_v29 = vpop.eup %1946  ;;  %v1313_v34 = vpop.f32.mrf.mxu3  ;;  %1387 = vst [vmem:[#allocation2 + $0xd0] sm:$0xff] %v1224_v1 }
 0x3bb   :  { %v1110_v35 = vmul.f32 %v1947_v29, %v2729_v13  ;;  %1388 = vst [vmem:[#allocation2 + $0xd8] sm:$0xff] %v1313_v34  ;;  %v1033_v12 = vpop.xlane.xlu2 %1032 }
 0x3bc   :  { %1950 = vrcp.f32 %v1033_v12 }
 0x3bd   :  { %v1130_v58 = vpack.c.bf16 %v1110_v35, %v1109_v61 }
 0x3be   :  { %v2786_v37 = vpop.eup %1948 }
 0x3bf   :  { %1742 = vmatmul.msk.bf16.gmra.mxu2 %vm766_vm0, %v1130_v58  ;;  %1758 = vmatmul.msk.bf16.gmra.mxu3 %vm766_vm0, %v1130_v58  ;;  %v1052_v41 = vsel %vm766_vm0, %v2786_v37, 0.0 }
 0x3c0   :  { %1053 = vadd.xlane.f32.xlu0 %v1052_v41 }
 0x3c1   :  { %v1227_v19 = vpop.f32.mrf.mxu2 }
 0x3c2   :  { %v1316_v31 = vpop.f32.mrf.mxu3  ;;  %1389 = vst [vmem:[#allocation2 + $0xe0] sm:$0xff] %v1227_v19  ;;  %v1951_v13 = vpop.eup %1950 }
 0x3c3   :  { %v1036_v56 = vpop.xlane.xlu0 %1035  ;;  %1390 = vst [vmem:[#allocation2 + $0xe8] sm:$0xff] %v1316_v31  ;;  %v1111_v50 = vmul.f32 %v1951_v13, %v2738_v15 }
 0x3c4   :  { %1952 = vrcp.f32 %v1036_v56 }
 0x3c9   :  { %v1229_v36 = vpop.f32.mrf.mxu2 }
 0x3ca   :  { %v1953_v46 = vpop.eup %1952  ;;  %v1318_v54 = vpop.f32.mrf.mxu3  ;;  %1391 = vst [vmem:[#allocation2 + $0xf0] sm:$0xff] %v1229_v36 }
 0x3cb   :  { %v1112_v32 = vmul.f32 %v1953_v46, %v2745_v39  ;;  %1392 = vst [vmem:[#allocation2 + $0xf8] sm:$0xff] %v1318_v54  ;;  %v1039_v49 = vpop.xlane.xlu1 %1038 }
 0x3cc   :  { %1954 = vrcp.f32 %v1039_v49 }
 0x3cd   :  { %v1131_v40 = vpack.c.bf16 %v1112_v32, %v1111_v50 }
 0x3cf   :  { %1743 = vmatmul.msk.bf16.gmra.mxu2 %vm766_vm0, %v1131_v40  ;;  %1759 = vmatmul.msk.bf16.gmra.mxu3 %vm766_vm0, %v1131_v40 }
 0x3d2   :  { %v1232_v51 = vpop.f32.mrf.mxu2  ;;  %v1321_v47 = vpop.f32.mrf.mxu3 }
 0x3d3   :  { %1393 = vst [vmem:[#allocation2 + $0x100] sm:$0xff] %v1232_v51  ;;  %v1042_v3 = vpop.xlane.xlu2 %1041  ;;  %v1955_v22 = vpop.eup %1954 }
 0x3d4   :  { %1394 = vst [vmem:[#allocation2 + $0x108] sm:$0xff] %v1321_v47  ;;  %1956 = vrcp.f32 %v1042_v3  ;;  %v1113_v39 = vmul.f32 %v1955_v22, %v2752_v43 }
 0x3da   :  { %v1957_v53 = vpop.eup %1956  ;;  %v1234_v15 = vpop.f32.mrf.mxu2 }
 0x3db   :  { %v1323_v57 = vpop.f32.mrf.mxu3  ;;  %v1114_v48 = vmul.f32 %v1957_v53, %v2757_v33  ;;  %1395 = vst [vmem:[#allocation2 + $0x110] sm:$0xff] %v1234_v15  ;;  %v1045_v2 = vpop.xlane.xlu0 %1044 }
 0x3dc   :  { %1396 = vst [vmem:[#allocation2 + $0x118] sm:$0xff] %v1323_v57  ;;  %1958 = vrcp.f32 %v1045_v2 }
 0x3dd   :  { %v1132_v60 = vpack.c.bf16 %v1114_v48, %v1113_v39 }
 0x3df   :  { %1744 = vmatmul.msk.bf16.gmra.mxu2 %vm766_vm0, %v1132_v60  ;;  %1760 = vmatmul.msk.bf16.gmra.mxu3 %vm766_vm0, %v1132_v60 }
 0x3e2   :  { %v1959_v52 = vpop.eup %1958 }
 0x3e3   :  { %v1115_v33 = vmul.f32 %v1959_v52, %v2761_v42 }
 0x421   :  { %v1237_v63 = vpop.f32.mrf.mxu2  ;;  %v1326_v5 = vpop.f32.mrf.mxu3 }
 0x422   :  { %1397 = vst [vmem:[#allocation2 + $0x120] sm:$0xff] %v1237_v63 }
 0x423   :  { %v1048_v20 = vpop.xlane.xlu1 %1047  ;;  %1398 = vst [vmem:[#allocation2 + $0x128] sm:$0xff] %v1326_v5 }
 0x424   :  { %1960 = vrcp.f32 %v1048_v20 }
 0x429   :  { %v1239_v43 = vpop.f32.mrf.mxu2  ;;  %v1328_v26 = vpop.f32.mrf.mxu3 }
 0x42a   :  { %v1961_v55 = vpop.eup %1960  ;;  %1399 = vst [vmem:[#allocation2 + $0x130] sm:$0xff] %v1239_v43 }
 0x42b   :  { %v1116_v28 = vmul.f32 %v1961_v55, %v2773_v14  ;;  %1400 = vst [vmem:[#allocation2 + $0x138] sm:$0xff] %v1328_v26  ;;  %v1051_v59 = vpop.xlane.xlu2 %1050 }
 0x42c   :  { %1962 = vrcp.f32 %v1051_v59 }
 0x42d   :  { %v1133_v0 = vpack.c.bf16 %v1116_v28, %v1115_v33 }
 0x42f   :  { %1745 = vmatmul.msk.bf16.gmra.mxu2 %vm766_vm0, %v1133_v0  ;;  %1761 = vmatmul.msk.bf16.gmra.mxu3 %vm766_vm0, %v1133_v0 }
 0x432   :  { %v1242_v7 = vpop.f32.mrf.mxu2  ;;  %v1331_v8 = vpop.f32.mrf.mxu3 }
 0x433   :  { %1401 = vst [vmem:[#allocation2 + $0x140] sm:$0xff] %v1242_v7  ;;  %v1054_v10 = vpop.xlane.xlu0 %1053  ;;  %v1963_v11 = vpop.eup %1962 }
 0x434   :  { %1402 = vst [vmem:[#allocation2 + $0x148] sm:$0xff] %v1331_v8  ;;  %1964 = vrcp.f32 %v1054_v10  ;;  %v1117_v6 = vmul.f32 %v1963_v11, %v2780_v21 }
 0x43a   :  { %v1965_v30 = vpop.eup %1964  ;;  %v1244_v42 = vpop.f32.mrf.mxu2 }
 0x43b   :  { %v1333_v4 = vpop.f32.mrf.mxu3  ;;  %v1118_v62 = vmul.f32 %v1965_v30, %v2786_v37  ;;  %1403 = vst [vmem:[#allocation2 + $0x150] sm:$0xff] %v1244_v42 }
 0x43c   :  { %1404 = vst [vmem:[#allocation2 + $0x158] sm:$0xff] %v1333_v4 }
 0x43d   :  { %v1134_v16 = vpack.c.bf16 %v1118_v62, %v1117_v6 }
 0x43f   :  { %1746 = vmatmul.msk.bf16.gmra.mxu2 %vm766_vm0, %v1134_v16  ;;  %1762 = vmatmul.msk.bf16.gmra.mxu3 %vm766_vm0, %v1134_v16 }
 0x442   :  { %v1247_v14 = vpop.f32.mrf.mxu2 }
 0x443   :  { %v1336_v38 = vpop.f32.mrf.mxu3  ;;  %1405 = vst [vmem:[#allocation2 + $0x160] sm:$0xff] %v1247_v14 }
 0x444   :  { %1406 = vst [vmem:[#allocation2 + $0x168] sm:$0xff] %v1336_v38 }
 0x44a   :  { %v1249_v18 = vpop.f32.mrf.mxu2 }
 0x44b   :  { %v1338_v24 = vpop.f32.mrf.mxu3  ;;  %1407 = vst [vmem:[#allocation2 + $0x170] sm:$0xff] %v1249_v18 }
 0x44c   :  { %1408 = vst [vmem:[#allocation2 + $0x178] sm:$0xff] %v1338_v24 }
 0x452   :  { %v1252_v44 = vpop.f32.mrf.mxu2 }
 0x453   :  { %v1341_v9 = vpop.f32.mrf.mxu3  ;;  %1409 = vst [vmem:[#allocation2 + $0x180] sm:$0xff] %v1252_v44 }
 0x454   :  { %1410 = vst [vmem:[#allocation2 + $0x188] sm:$0xff] %v1341_v9 }
 0x45a   :  { %v1254_v17 = vpop.f32.mrf.mxu2 }
 0x45b   :  { %v1343_v45 = vpop.f32.mrf.mxu3  ;;  %1411 = vst [vmem:[#allocation2 + $0x190] sm:$0xff] %v1254_v17 }
 0x45c   :  { %1412 = vst [vmem:[#allocation2 + $0x198] sm:$0xff] %v1343_v45 }
 0x462   :  { %v1257_v21 = vpop.f32.mrf.mxu2 }
 0x463   :  { %v1346_v23 = vpop.f32.mrf.mxu3  ;;  %1413 = vst [vmem:[#allocation2 + $0x1a0] sm:$0xff] %v1257_v21 }
 0x464   :  { %1414 = vst [vmem:[#allocation2 + $0x1a8] sm:$0xff] %v1346_v23 }
 0x46a   :  { %v1259_v25 = vpop.f32.mrf.mxu2 }
 0x46b   :  { %v1348_v27 = vpop.f32.mrf.mxu3  ;;  %1415 = vst [vmem:[#allocation2 + $0x1b0] sm:$0xff] %v1259_v25 }
 0x46c   :  { %1416 = vst [vmem:[#allocation2 + $0x1b8] sm:$0xff] %v1348_v27 }
 0x4b2   :  { %v1262_v29 = vpop.f32.mrf.mxu2  ;;  %v1351_v1 = vpop.f32.mrf.mxu3 }
 0x4b3   :  { %1417 = vst [vmem:[#allocation2 + $0x1c0] sm:$0xff] %v1262_v29 }
 0x4b4   :  { %1418 = vst [vmem:[#allocation2 + $0x1c8] sm:$0xff] %v1351_v1 }
 0x4ba   :  { %v1264_v34 = vpop.f32.mrf.mxu2  ;;  %v1353_v61 = vpop.f32.mrf.mxu3 }
 0x4bb   :  { %1419 = vst [vmem:[#allocation2 + $0x1d0] sm:$0xff] %v1264_v34 }
 0x4bc   :  { %1420 = vst [vmem:[#allocation2 + $0x1d8] sm:$0xff] %v1353_v61 }
 0x4c2   :  { %v1267_v35 = vpop.f32.mrf.mxu2  ;;  %v1356_v58 = vpop.f32.mrf.mxu3 }
 0x4c3   :  { %1421 = vst [vmem:[#allocation2 + $0x1e0] sm:$0xff] %v1267_v35 }
 0x4c4   :  { %1422 = vst [vmem:[#allocation2 + $0x1e8] sm:$0xff] %v1356_v58 }
 0x4ca   :  { %v1269_v37 = vpop.f32.mrf.mxu2  ;;  %v1358_v12 = vpop.f32.mrf.mxu3 }
 0x4cb   :  { %1423 = vst [vmem:[#allocation2 + $0x1f0] sm:$0xff] %v1269_v37 }
 0x4cc   :  { %1424 = vst [vmem:[#allocation2 + $0x1f8] sm:$0xff] %v1358_v12 }
 0x4cd   :  { %1437 = dma.vmem_to_hbm [thread:$0]  %s1430_s19, 8192, %s1432_s22, [#allocation3], %s1993_s23, %s1993_s23, %s1994_s24  }
 0x4ce   :  { %1990 = dma.done.wait [#allocation3], 8192  }
 0x4cf   :  { %1991 = vsyncadd [#allocation3], 4294959104 }
 0x4d0   :  { %1442 = vsyncpa [#allocation3], 1 }

</bundles_post_ra>
